<compile_context>
chip_gen: v5e
topology: v5e:2x2
jax: 0.10.0
libtpu: 0.0.40
codegen_flags: <defaults>
</compile_context>

<pallas_src>
import jax
import jax.numpy as jnp
from jax import lax
from jax.experimental import pallas as pl
from jax.experimental.pallas import tpu as pltpu


# ------------------------------ Pallas kernel --------------------------------

def _starnet_fused_kernel(xcat_ref, a1_ref, a2_ref, wf1_ref, wf2_ref,
                          b1_ref, b2_ref, bf1_ref, bf2_ref,
                          out_ref, pad_ref):
    """Fully fused StarNetEncoder forward.

    xcat_ref : (B, H, 3*W*Cin)   bf16  image with 3 y-taps pre-stacked on lanes
    a1_ref   : (3*W*Cin, W*C1)   bf16  conv1 block-banded weights (taps stacked)
    a2_ref   : (3, W*C1, W*C2)   bf16  conv2 block-banded weights (one per tap)
    wf1_ref  : (H, W*C2, HID)    bf16  fc1 weights, split per image row
    wf2_ref  : (HID, 2)          f32   fc2 weights
    b*_ref   : (1, ...)          f32   biases (conv biases pre-tiled over x)
    out_ref  : (B, 2)            f32   [:, 0] = mean, [:, 1] = sd
    pad_ref  : (B, H+2, W*C1)    bf16  VMEM scratch: y-padded conv1 activation
    """
    B, H, WCin3 = xcat_ref.shape
    WC1 = a1_ref.shape[1]
    WC2 = a2_ref.shape[2]
    HID = wf2_ref.shape[0]

    # ---- conv1: one banded matmul (im2col fully fused, lane-dense) -----------
    acc1 = jnp.dot(xcat_ref[...].reshape(B * H, WCin3), a1_ref[...],
                   preferred_element_type=jnp.float32)
    h1 = jnp.maximum(acc1 + b1_ref[...], 0.0)             # (B*H, W*C1) f32

    # keep the y-padded conv1 activation in VMEM scratch (border rows = zeros)
    pad_ref[...] = jnp.zeros_like(pad_ref)
    pad_ref[:, 1:H + 1, :] = h1.reshape(B, H, WC1).astype(pad_ref.dtype)

    # ---- conv2: 3 banded matmuls over the y-taps -----------------------------
    acc2 = jnp.zeros((B * H, WC2), jnp.float32)
    for dy in range(3):
        xs = pad_ref[:, dy:dy + H, :].reshape(B * H, WC1)
        acc2 = acc2 + jnp.dot(xs, a2_ref[dy],
                              preferred_element_type=jnp.float32)
    h2 = jnp.maximum(acc2 + b2_ref[...], 0.0)              # (B*H, W*C2) f32
    h2 = h2.reshape(B, H, WC2)

    # ---- fc1: flatten fused as a sum of per-row matmuls (no relayout) --------
    z = jnp.zeros((B, HID), jnp.float32)
    for y in range(H):
        row = h2[:, y:y + 1, :].reshape(B, WC2).astype(jnp.bfloat16)
        z = z + jnp.dot(row, wf1_ref[y],
                        preferred_element_type=jnp.float32)
    z = jnp.maximum(z + bf1_ref[...], 0.0)                 # (B, HID) f32

    # ---- fc2 + StarNet head (single lane-contiguous store) -------------------
    h = jnp.dot(z, wf2_ref[...],
                preferred_element_type=jnp.float32) + bf2_ref[...]   # (B, 2)
    # PyTorch Softplus (beta=1, threshold=20)
    sp = jnp.where(h > 20.0, h,
                   jnp.log1p(jnp.exp(jnp.minimum(h, 20.0))))
    col = lax.broadcasted_iota(jnp.int32, h.shape, 1)
    out_ref[...] = jnp.where(col == 0, h, sp + 0.001)


# ------------------------------- JAX wrapper ----------------------------------

def _band_conv_weights(w, width):
    """(3, 3, Cin, Cout) conv kernel -> 3 block-banded (W*Cin, W*Cout) matrices.

    A_dy[x_in*Cin + ci, x*Cout + co] = w[dy, x_in - x + 1, ci, co]
    (zero outside the band; x zero-padding is implicit in the clipping)."""
    mats = []
    for dy in range(3):
        a = jnp.zeros((width * w.shape[2], width * w.shape[3]), jnp.float32)
        for dx in range(3):
            a = a + jnp.kron(jnp.eye(width, k=1 - dx, dtype=jnp.float32),
                             w[dy, dx])
        mats.append(a)
    return jnp.stack(mats)                                 # (3, W*Cin, W*Cout)


def starnet_encoder_forward(image_nchw, params):
    """Equivalent of StarNetEncoder.forward(image) -> (mean, sd)."""
    B, Cin, H, W = image_nchw.shape
    w1, b1 = params["w1"], params["b1"]                    # (3,3,Cin,C1), (C1,)
    w2, b2 = params["w2"], params["b2"]                    # (3,3,C1,C2), (C2,)
    wf1, bf1 = params["wf1"], params["bf1"]                # (H*W*C2, HID), (HID,)
    wf2, bf2 = params["wf2"], params["bf2"]                # (HID, 2), (2,)
    C1, C2 = w1.shape[3], w2.shape[3]
    HID = wf2.shape[0]

    # NHWC, flatten (x, c) onto lanes, zero-pad in y
    x = jnp.transpose(image_nchw, (0, 2, 3, 1)).astype(jnp.float32)
    x = x.reshape(B, H, W * Cin)
    xp = jnp.pad(x, ((0, 0), (1, 1), (0, 0)))
    # pre-stack the 3 conv1 y-taps on the lane dim: (B, H, 3*W*Cin)
    x_cat = jnp.concatenate(
        [xp[:, 0:H, :], xp[:, 1:H + 1, :], xp[:, 2:H + 2, :]],
        axis=-1).astype(jnp.bfloat16)

    a1 = _band_conv_weights(w1, W).reshape(3 * W * Cin, W * C1)
    a1 = a1.astype(jnp.bfloat16)                           # (3*W*Cin, W*C1)
    a2 = _band_conv_weights(w2, W).astype(jnp.bfloat16)    # (3, W*C1, W*C2)
    wf1_r = wf1.reshape(H, W * C2, HID).astype(jnp.bfloat16)

    b1_row = jnp.tile(b1, W).reshape(1, W * C1).astype(jnp.float32)
    b2_row = jnp.tile(b2, W).reshape(1, W * C2).astype(jnp.float32)
    bf1_row = bf1.reshape(1, HID).astype(jnp.float32)
    bf2_row = bf2.reshape(1, 2).astype(jnp.float32)

    out = pl.pallas_call(
        _starnet_fused_kernel,
        out_shape=jax.ShapeDtypeStruct((B, 2), jnp.float32),
        scratch_shapes=[pltpu.VMEM((B, H + 2, W * C1), jnp.bfloat16)],
        compiler_params=pltpu.CompilerParams(
            vmem_limit_bytes=32 * 1024 * 1024),
    )(x_cat, a1, a2, wf1_r, wf2.astype(jnp.float32),
      b1_row, b2_row, bf1_row, bf2_row)

    return out[:, 0], out[:, 1]


# --------------------------- pure-JAX reference --------------------------------

def _reference_forward(image_nchw, params):
    """f32 reference (weights rounded to bf16 to match the kernel's precision)."""
    def bf(t):
        return t.astype(jnp.bfloat16).astype(jnp.float32)

    B, Cin, H, W = image_nchw.shape
    x = bf(jnp.transpose(image_nchw, (0, 2, 3, 1)).astype(jnp.float32))

    def conv3x3_relu(inp, w, b):
        Bx, Hx, Wx, Cx = inp.shape
        xp = jnp.pad(inp, ((0, 0), (1, 1), (1, 1), (0, 0)))
        cols = [xp[:, dy:dy + Hx, dx:dx + Wx, :]
                for dy in range(3) for dx in range(3)]
        p = jnp.stack(cols, axis=3).reshape(Bx * Hx * Wx, 9 * Cx)
        y = p @ bf(w).reshape(9 * Cx, -1) + b
        return jnp.maximum(y, 0.0).reshape(Bx, Hx, Wx, -1)

    h = conv3x3_relu(x, params["w1"], params["b1"])
    h = conv3x3_relu(h, params["w2"], params["b2"])
    flat = h.reshape(B, -1)                                 # NHWC flatten order
    z = jnp.maximum(flat @ bf(params["wf1"]) + params["bf1"], 0.0)
    o = z @ params["wf2"] + params["bf2"]
    return o[:, 0], jax.nn.softplus(o[:, 1]) + 0.001


# ---------------------------------- init ---------------------------------------

def init_params(key, *, cin, c1, c2, hidden, slen):
    """Deterministic PyTorch-style uniform(-1/sqrt(fan_in), 1/sqrt(fan_in)) init."""
    ks = jax.random.split(key, 8)

    def u(k, shape, fan_in):
        bound = 1.0 / float(fan_in) ** 0.5
        return jax.random.uniform(k, shape, jnp.float32, -bound, bound)

    return {
        "w1": u(ks[0], (3, 3, cin, c1), 9 * cin),
        "b1": u(ks[1], (c1,), 9 * cin),
        "w2": u(ks[2], (3, 3, c1, c2), 9 * c1),
        "b2": u(ks[3], (c2,), 9 * c1),
        "wf1": u(ks[4], (slen * slen * c2, hidden), c2 * slen * slen),
        "bf1": u(ks[5], (hidden,), c2 * slen * slen),
        "wf2": u(ks[6], (hidden, 2), hidden),
        "bf2": u(ks[7], (2,), hidden),
    }


if __name__ == "__main__":
    # small shapes consistent with the module (slen scaled down from 51 -> 16)
    B, C, SLEN = 2, 1, 16
    C1, C2, HIDDEN = 8, 8, 64

    key = jax.random.PRNGKey(0)
    k_img, k_par = jax.random.split(key)
    image = jax.random.uniform(k_img, (B, C, SLEN, SLEN), jnp.float32)
    params = init_params(k_par, cin=C, c1=C1, c2=C2, hidden=HIDDEN, slen=SLEN)

    fwd = jax.jit(lambda img: starnet_encoder_forward(img, params))
    mean, sd = fwd(image)
    jax.block_until_ready((mean, sd))

    mean_ref, sd_ref = _reference_forward(image, params)
    jax.block_until_ready((mean_ref, sd_ref))

    assert mean.shape == (B,) and sd.shape == (B,)
    assert mean.dtype == jnp.float32 and sd.dtype == jnp.float32
    assert bool(jnp.all(sd >= 0.001))  # softplus(x) >= 0  =>  sd >= 0.001
    assert bool(jnp.allclose(mean, mean_ref, rtol=5e-2, atol=5e-2)), (mean, mean_ref)
    assert bool(jnp.allclose(sd, sd_ref, rtol=5e-2, atol=5e-2)), (sd, sd_ref)
    print("KERNEL_OK")
</pallas_src>

<mosaic_0001>
module attributes {stable_mosaic.version = 11 : i64} {
  func.func @_starnet_fused_kernel(%arg0: memref<2x16x48xbf16, #tpu.memory_space<vmem>>, %arg1: memref<48x128xbf16, #tpu.memory_space<vmem>>, %arg2: memref<3x128x128xbf16, #tpu.memory_space<vmem>>, %arg3: memref<16x128x64xbf16, #tpu.memory_space<vmem>>, %arg4: memref<64x2xf32, #tpu.memory_space<vmem>>, %arg5: memref<1x128xf32, #tpu.memory_space<vmem>>, %arg6: memref<1x128xf32, #tpu.memory_space<vmem>>, %arg7: memref<1x64xf32, #tpu.memory_space<vmem>>, %arg8: memref<1x2xf32, #tpu.memory_space<vmem>>, %arg9: memref<2x2xf32, #tpu.memory_space<vmem>>, %arg10: memref<2x18x128xbf16, #tpu.memory_space<vmem>>) attributes {dimension_semantics = [], scalar_prefetch = 0 : i64, scratch_operands = 1 : i64, tpu.core_type = #tpu.core_type<tc>} {
    %c0 = arith.constant 0 : index
    %c0_0 = arith.constant 0 : index
    %c0_1 = arith.constant 0 : index
    %0 = vector.load %arg0[%c0, %c0_0, %c0_1] : memref<2x16x48xbf16, #tpu.memory_space<vmem>>, vector<2x16x48xbf16>
    %1 = vector.shape_cast %0 : vector<2x16x48xbf16> to vector<32x48xbf16>
    %c0_2 = arith.constant 0 : index
    %c0_3 = arith.constant 0 : index
    %2 = vector.load %arg1[%c0_2, %c0_3] : memref<48x128xbf16, #tpu.memory_space<vmem>>, vector<48x128xbf16>
    %cst = arith.constant dense<0.000000e+00> : vector<32x128xf32>
    %3 = tpu.matmul %1, %2, %cst {dimension_numbers = #tpu.dot_dimension_numbers<[1], [0], [0], [1], [0, 0, 1, 1], [], []>} : vector<32x48xbf16>, vector<48x128xbf16>, vector<32x128xf32> -> vector<32x128xf32>
    %c0_4 = arith.constant 0 : index
    %c0_5 = arith.constant 0 : index
    %4 = vector.load %arg5[%c0_4, %c0_5] : memref<1x128xf32, #tpu.memory_space<vmem>>, vector<1x128xf32>
    %5 = vector.broadcast %4 : vector<1x128xf32> to vector<32x128xf32>
    %6 = arith.addf %3, %5 : vector<32x128xf32>
    %cst_6 = arith.constant 0.000000e+00 : f32
    %7 = vector.broadcast %cst_6 : f32 to vector<32x128xf32>
    %8 = arith.maximumf %6, %7 : vector<32x128xf32>
    %cst_7 = arith.constant 0.000000e+00 : bf16
    %9 = vector.broadcast %cst_7 : bf16 to vector<2x18x128xbf16>
    %c0_8 = arith.constant 0 : index
    %c0_9 = arith.constant 0 : index
    %c0_10 = arith.constant 0 : index
    %10 = vector.load %arg10[%c0_8, %c0_9, %c0_10] : memref<2x18x128xbf16, #tpu.memory_space<vmem>>, vector<2x18x128xbf16>
    tpu.vector_store %arg10[%c0_8, %c0_9, %c0_10], %9 {strides = array<i32>} : memref<2x18x128xbf16, #tpu.memory_space<vmem>>, vector<2x18x128xbf16>,
    %11 = vector.shape_cast %8 : vector<32x128xf32> to vector<2x16x128xf32>
    %12 = arith.truncf %11 : vector<2x16x128xf32> to vector<2x16x128xbf16>
    %c0_11 = arith.constant 0 : index
    %c1 = arith.constant 1 : index
    %c0_12 = arith.constant 0 : index
    %13 = vector.load %arg10[%c0_11, %c1, %c0_12] : memref<2x18x128xbf16, #tpu.memory_space<vmem>>, vector<2x16x128xbf16>
    tpu.vector_store %arg10[%c0_11, %c1, %c0_12], %12 {strides = array<i32>} : memref<2x18x128xbf16, #tpu.memory_space<vmem>>, vector<2x16x128xbf16>,
    %cst_13 = arith.constant 0.000000e+00 : f32
    %14 = vector.broadcast %cst_13 : f32 to vector<32x128xf32>
    %c0_14 = arith.constant 0 : index
    %c0_15 = arith.constant 0 : index
    %c0_16 = arith.constant 0 : index
    %15 = vector.load %arg10[%c0_14, %c0_15, %c0_16] : memref<2x18x128xbf16, #tpu.memory_space<vmem>>, vector<2x16x128xbf16>
    %16 = vector.shape_cast %15 : vector<2x16x128xbf16> to vector<32x128xbf16>
    %c0_17 = arith.constant 0 : index
    %c0_18 = arith.constant 0 : index
    %c0_19 = arith.constant 0 : index
    %17 = vector.load %arg2[%c0_17, %c0_18, %c0_19] : memref<3x128x128xbf16, #tpu.memory_space<vmem>>, vector<1x128x128xbf16>
    %18 = vector.shape_cast %17 : vector<1x128x128xbf16> to vector<128x128xbf16>
    %cst_20 = arith.constant dense<0.000000e+00> : vector<32x128xf32>
    %19 = tpu.matmul %16, %18, %cst_20 {dimension_numbers = #tpu.dot_dimension_numbers<[1], [0], [0], [1], [0, 0, 1, 1], [], []>} : vector<32x128xbf16>, vector<128x128xbf16>, vector<32x128xf32> -> vector<32x128xf32>
    %20 = arith.addf %14, %19 : vector<32x128xf32>
    %c0_21 = arith.constant 0 : index
    %c1_22 = arith.constant 1 : index
    %c0_23 = arith.constant 0 : index
    %21 = vector.load %arg10[%c0_21, %c1_22, %c0_23] : memref<2x18x128xbf16, #tpu.memory_space<vmem>>, vector<2x16x128xbf16>
    %22 = vector.shape_cast %21 : vector<2x16x128xbf16> to vector<32x128xbf16>
    %c1_24 = arith.constant 1 : index
    %c0_25 = arith.constant 0 : index
    %c0_26 = arith.constant 0 : index
    %23 = vector.load %arg2[%c1_24, %c0_25, %c0_26] : memref<3x128x128xbf16, #tpu.memory_space<vmem>>, vector<1x128x128xbf16>
    %24 = vector.shape_cast %23 : vector<1x128x128xbf16> to vector<128x128xbf16>
    %cst_27 = arith.constant dense<0.000000e+00> : vector<32x128xf32>
    %25 = tpu.matmul %22, %24, %cst_27 {dimension_numbers = #tpu.dot_dimension_numbers<[1], [0], [0], [1], [0, 0, 1, 1], [], []>} : vector<32x128xbf16>, vector<128x128xbf16>, vector<32x128xf32> -> vector<32x128xf32>
    %26 = arith.addf %20, %25 : vector<32x128xf32>
    %c0_28 = arith.constant 0 : index
    %c2 = arith.constant 2 : index
    %c0_29 = arith.constant 0 : index
    %27 = vector.load %arg10[%c0_28, %c2, %c0_29] : memref<2x18x128xbf16, #tpu.memory_space<vmem>>, vector<2x16x128xbf16>
    %28 = vector.shape_cast %27 : vector<2x16x128xbf16> to vector<32x128xbf16>
    %c2_30 = arith.constant 2 : index
    %c0_31 = arith.constant 0 : index
    %c0_32 = arith.constant 0 : index
    %29 = vector.load %arg2[%c2_30, %c0_31, %c0_32] : memref<3x128x128xbf16, #tpu.memory_space<vmem>>, vector<1x128x128xbf16>
    %30 = vector.shape_cast %29 : vector<1x128x128xbf16> to vector<128x128xbf16>
    %cst_33 = arith.constant dense<0.000000e+00> : vector<32x128xf32>
    %31 = tpu.matmul %28, %30, %cst_33 {dimension_numbers = #tpu.dot_dimension_numbers<[1], [0], [0], [1], [0, 0, 1, 1], [], []>} : vector<32x128xbf16>, vector<128x128xbf16>, vector<32x128xf32> -> vector<32x128xf32>
    %32 = arith.addf %26, %31 : vector<32x128xf32>
    %c0_34 = arith.constant 0 : index
    %c0_35 = arith.constant 0 : index
    %33 = vector.load %arg6[%c0_34, %c0_35] : memref<1x128xf32, #tpu.memory_space<vmem>>, vector<1x128xf32>
    %34 = vector.broadcast %33 : vector<1x128xf32> to vector<32x128xf32>
    %35 = arith.addf %32, %34 : vector<32x128xf32>
    %cst_36 = arith.constant 0.000000e+00 : f32
    %36 = vector.broadcast %cst_36 : f32 to vector<32x128xf32>
    %37 = arith.maximumf %35, %36 : vector<32x128xf32>
    %38 = vector.shape_cast %37 : vector<32x128xf32> to vector<2x16x128xf32>
    %cst_37 = arith.constant 0.000000e+00 : f32
    %39 = vector.broadcast %cst_37 : f32 to vector<2x64xf32>
    %40 = vector.extract_strided_slice %38 {offsets = [0, 0, 0], sizes = [2, 1, 128], strides = [1, 1, 1]} : vector<2x16x128xf32> to vector<2x1x128xf32>
    %41 = vector.shape_cast %40 : vector<2x1x128xf32> to vector<2x128xf32>
    %42 = arith.truncf %41 : vector<2x128xf32> to vector<2x128xbf16>
    %c0_38 = arith.constant 0 : index
    %c0_39 = arith.constant 0 : index
    %c0_40 = arith.constant 0 : index
    %43 = vector.load %arg3[%c0_38, %c0_39, %c0_40] : memref<16x128x64xbf16, #tpu.memory_space<vmem>>, vector<1x128x64xbf16>
    %44 = vector.shape_cast %43 : vector<1x128x64xbf16> to vector<128x64xbf16>
    %cst_41 = arith.constant dense<0.000000e+00> : vector<2x64xf32>
    %45 = tpu.matmul %42, %44, %cst_41 {dimension_numbers = #tpu.dot_dimension_numbers<[1], [0], [0], [1], [0, 0, 1, 1], [], []>} : vector<2x128xbf16>, vector<128x64xbf16>, vector<2x64xf32> -> vector<2x64xf32>
    %46 = arith.addf %39, %45 : vector<2x64xf32>
    %47 = vector.extract_strided_slice %38 {offsets = [0, 1, 0], sizes = [2, 1, 128], strides = [1, 1, 1]} : vector<2x16x128xf32> to vector<2x1x128xf32>
    %48 = vector.shape_cast %47 : vector<2x1x128xf32> to vector<2x128xf32>
    %49 = arith.truncf %48 : vector<2x128xf32> to vector<2x128xbf16>
    %c1_42 = arith.constant 1 : index
    %c0_43 = arith.constant 0 : index
    %c0_44 = arith.constant 0 : index
    %50 = vector.load %arg3[%c1_42, %c0_43, %c0_44] : memref<16x128x64xbf16, #tpu.memory_space<vmem>>, vector<1x128x64xbf16>
    %51 = vector.shape_cast %50 : vector<1x128x64xbf16> to vector<128x64xbf16>
    %cst_45 = arith.constant dense<0.000000e+00> : vector<2x64xf32>
    %52 = tpu.matmul %49, %51, %cst_45 {dimension_numbers = #tpu.dot_dimension_numbers<[1], [0], [0], [1], [0, 0, 1, 1], [], []>} : vector<2x128xbf16>, vector<128x64xbf16>, vector<2x64xf32> -> vector<2x64xf32>
    %53 = arith.addf %46, %52 : vector<2x64xf32>
    %54 = vector.extract_strided_slice %38 {offsets = [0, 2, 0], sizes = [2, 1, 128], strides = [1, 1, 1]} : vector<2x16x128xf32> to vector<2x1x128xf32>
    %55 = vector.shape_cast %54 : vector<2x1x128xf32> to vector<2x128xf32>
    %56 = arith.truncf %55 : vector<2x128xf32> to vector<2x128xbf16>
    %c2_46 = arith.constant 2 : index
    %c0_47 = arith.constant 0 : index
    %c0_48 = arith.constant 0 : index
    %57 = vector.load %arg3[%c2_46, %c0_47, %c0_48] : memref<16x128x64xbf16, #tpu.memory_space<vmem>>, vector<1x128x64xbf16>
    %58 = vector.shape_cast %57 : vector<1x128x64xbf16> to vector<128x64xbf16>
    %cst_49 = arith.constant dense<0.000000e+00> : vector<2x64xf32>
    %59 = tpu.matmul %56, %58, %cst_49 {dimension_numbers = #tpu.dot_dimension_numbers<[1], [0], [0], [1], [0, 0, 1, 1], [], []>} : vector<2x128xbf16>, vector<128x64xbf16>, vector<2x64xf32> -> vector<2x64xf32>
    %60 = arith.addf %53, %59 : vector<2x64xf32>
    %61 = vector.extract_strided_slice %38 {offsets = [0, 3, 0], sizes = [2, 1, 128], strides = [1, 1, 1]} : vector<2x16x128xf32> to vector<2x1x128xf32>
    %62 = vector.shape_cast %61 : vector<2x1x128xf32> to vector<2x128xf32>
    %63 = arith.truncf %62 : vector<2x128xf32> to vector<2x128xbf16>
    %c3 = arith.constant 3 : index
    %c0_50 = arith.constant 0 : index
    %c0_51 = arith.constant 0 : index
    %64 = vector.load %arg3[%c3, %c0_50, %c0_51] : memref<16x128x64xbf16, #tpu.memory_space<vmem>>, vector<1x128x64xbf16>
    %65 = vector.shape_cast %64 : vector<1x128x64xbf16> to vector<128x64xbf16>
    %cst_52 = arith.constant dense<0.000000e+00> : vector<2x64xf32>
    %66 = tpu.matmul %63, %65, %cst_52 {dimension_numbers = #tpu.dot_dimension_numbers<[1], [0], [0], [1], [0, 0, 1, 1], [], []>} : vector<2x128xbf16>, vector<128x64xbf16>, vector<2x64xf32> -> vector<2x64xf32>
    %67 = arith.addf %60, %66 : vector<2x64xf32>
    %68 = vector.extract_strided_slice %38 {offsets = [0, 4, 0], sizes = [2, 1, 128], strides = [1, 1, 1]} : vector<2x16x128xf32> to vector<2x1x128xf32>
    %69 = vector.shape_cast %68 : vector<2x1x128xf32> to vector<2x128xf32>
    %70 = arith.truncf %69 : vector<2x128xf32> to vector<2x128xbf16>
    %c4 = arith.constant 4 : index
    %c0_53 = arith.constant 0 : index
    %c0_54 = arith.constant 0 : index
    %71 = vector.load %arg3[%c4, %c0_53, %c0_54] : memref<16x128x64xbf16, #tpu.memory_space<vmem>>, vector<1x128x64xbf16>
    %72 = vector.shape_cast %71 : vector<1x128x64xbf16> to vector<128x64xbf16>
    %cst_55 = arith.constant dense<0.000000e+00> : vector<2x64xf32>
    %73 = tpu.matmul %70, %72, %cst_55 {dimension_numbers = #tpu.dot_dimension_numbers<[1], [0], [0], [1], [0, 0, 1, 1], [], []>} : vector<2x128xbf16>, vector<128x64xbf16>, vector<2x64xf32> -> vector<2x64xf32>
    %74 = arith.addf %67, %73 : vector<2x64xf32>
    %75 = vector.extract_strided_slice %38 {offsets = [0, 5, 0], sizes = [2, 1, 128], strides = [1, 1, 1]} : vector<2x16x128xf32> to vector<2x1x128xf32>
    %76 = vector.shape_cast %75 : vector<2x1x128xf32> to vector<2x128xf32>
    %77 = arith.truncf %76 : vector<2x128xf32> to vector<2x128xbf16>
    %c5 = arith.constant 5 : index
    %c0_56 = arith.constant 0 : index
    %c0_57 = arith.constant 0 : index
    %78 = vector.load %arg3[%c5, %c0_56, %c0_57] : memref<16x128x64xbf16, #tpu.memory_space<vmem>>, vector<1x128x64xbf16>
    %79 = vector.shape_cast %78 : vector<1x128x64xbf16> to vector<128x64xbf16>
    %cst_58 = arith.constant dense<0.000000e+00> : vector<2x64xf32>
    %80 = tpu.matmul %77, %79, %cst_58 {dimension_numbers = #tpu.dot_dimension_numbers<[1], [0], [0], [1], [0, 0, 1, 1], [], []>} : vector<2x128xbf16>, vector<128x64xbf16>, vector<2x64xf32> -> vector<2x64xf32>
    %81 = arith.addf %74, %80 : vector<2x64xf32>
    %82 = vector.extract_strided_slice %38 {offsets = [0, 6, 0], sizes = [2, 1, 128], strides = [1, 1, 1]} : vector<2x16x128xf32> to vector<2x1x128xf32>
    %83 = vector.shape_cast %82 : vector<2x1x128xf32> to vector<2x128xf32>
    %84 = arith.truncf %83 : vector<2x128xf32> to vector<2x128xbf16>
    %c6 = arith.constant 6 : index
    %c0_59 = arith.constant 0 : index
    %c0_60 = arith.constant 0 : index
    %85 = vector.load %arg3[%c6, %c0_59, %c0_60] : memref<16x128x64xbf16, #tpu.memory_space<vmem>>, vector<1x128x64xbf16>
    %86 = vector.shape_cast %85 : vector<1x128x64xbf16> to vector<128x64xbf16>
    %cst_61 = arith.constant dense<0.000000e+00> : vector<2x64xf32>
    %87 = tpu.matmul %84, %86, %cst_61 {dimension_numbers = #tpu.dot_dimension_numbers<[1], [0], [0], [1], [0, 0, 1, 1], [], []>} : vector<2x128xbf16>, vector<128x64xbf16>, vector<2x64xf32> -> vector<2x64xf32>
    %88 = arith.addf %81, %87 : vector<2x64xf32>
    %89 = vector.extract_strided_slice %38 {offsets = [0, 7, 0], sizes = [2, 1, 128], strides = [1, 1, 1]} : vector<2x16x128xf32> to vector<2x1x128xf32>
    %90 = vector.shape_cast %89 : vector<2x1x128xf32> to vector<2x128xf32>
    %91 = arith.truncf %90 : vector<2x128xf32> to vector<2x128xbf16>
    %c7 = arith.constant 7 : index
    %c0_62 = arith.constant 0 : index
    %c0_63 = arith.constant 0 : index
    %92 = vector.load %arg3[%c7, %c0_62, %c0_63] : memref<16x128x64xbf16, #tpu.memory_space<vmem>>, vector<1x128x64xbf16>
    %93 = vector.shape_cast %92 : vector<1x128x64xbf16> to vector<128x64xbf16>
    %cst_64 = arith.constant dense<0.000000e+00> : vector<2x64xf32>
    %94 = tpu.matmul %91, %93, %cst_64 {dimension_numbers = #tpu.dot_dimension_numbers<[1], [0], [0], [1], [0, 0, 1, 1], [], []>} : vector<2x128xbf16>, vector<128x64xbf16>, vector<2x64xf32> -> vector<2x64xf32>
    %95 = arith.addf %88, %94 : vector<2x64xf32>
    %96 = vector.extract_strided_slice %38 {offsets = [0, 8, 0], sizes = [2, 1, 128], strides = [1, 1, 1]} : vector<2x16x128xf32> to vector<2x1x128xf32>
    %97 = vector.shape_cast %96 : vector<2x1x128xf32> to vector<2x128xf32>
    %98 = arith.truncf %97 : vector<2x128xf32> to vector<2x128xbf16>
    %c8 = arith.constant 8 : index
    %c0_65 = arith.constant 0 : index
    %c0_66 = arith.constant 0 : index
    %99 = vector.load %arg3[%c8, %c0_65, %c0_66] : memref<16x128x64xbf16, #tpu.memory_space<vmem>>, vector<1x128x64xbf16>
    %100 = vector.shape_cast %99 : vector<1x128x64xbf16> to vector<128x64xbf16>
    %cst_67 = arith.constant dense<0.000000e+00> : vector<2x64xf32>
    %101 = tpu.matmul %98, %100, %cst_67 {dimension_numbers = #tpu.dot_dimension_numbers<[1], [0], [0], [1], [0, 0, 1, 1], [], []>} : vector<2x128xbf16>, vector<128x64xbf16>, vector<2x64xf32> -> vector<2x64xf32>
    %102 = arith.addf %95, %101 : vector<2x64xf32>
    %103 = vector.extract_strided_slice %38 {offsets = [0, 9, 0], sizes = [2, 1, 128], strides = [1, 1, 1]} : vector<2x16x128xf32> to vector<2x1x128xf32>
    %104 = vector.shape_cast %103 : vector<2x1x128xf32> to vector<2x128xf32>
    %105 = arith.truncf %104 : vector<2x128xf32> to vector<2x128xbf16>
    %c9 = arith.constant 9 : index
    %c0_68 = arith.constant 0 : index
    %c0_69 = arith.constant 0 : index
    %106 = vector.load %arg3[%c9, %c0_68, %c0_69] : memref<16x128x64xbf16, #tpu.memory_space<vmem>>, vector<1x128x64xbf16>
    %107 = vector.shape_cast %106 : vector<1x128x64xbf16> to vector<128x64xbf16>
    %cst_70 = arith.constant dense<0.000000e+00> : vector<2x64xf32>
    %108 = tpu.matmul %105, %107, %cst_70 {dimension_numbers = #tpu.dot_dimension_numbers<[1], [0], [0], [1], [0, 0, 1, 1], [], []>} : vector<2x128xbf16>, vector<128x64xbf16>, vector<2x64xf32> -> vector<2x64xf32>
    %109 = arith.addf %102, %108 : vector<2x64xf32>
    %110 = vector.extract_strided_slice %38 {offsets = [0, 10, 0], sizes = [2, 1, 128], strides = [1, 1, 1]} : vector<2x16x128xf32> to vector<2x1x128xf32>
    %111 = vector.shape_cast %110 : vector<2x1x128xf32> to vector<2x128xf32>
    %112 = arith.truncf %111 : vector<2x128xf32> to vector<2x128xbf16>
    %c10 = arith.constant 10 : index
    %c0_71 = arith.constant 0 : index
    %c0_72 = arith.constant 0 : index
    %113 = vector.load %arg3[%c10, %c0_71, %c0_72] : memref<16x128x64xbf16, #tpu.memory_space<vmem>>, vector<1x128x64xbf16>
    %114 = vector.shape_cast %113 : vector<1x128x64xbf16> to vector<128x64xbf16>
    %cst_73 = arith.constant dense<0.000000e+00> : vector<2x64xf32>
    %115 = tpu.matmul %112, %114, %cst_73 {dimension_numbers = #tpu.dot_dimension_numbers<[1], [0], [0], [1], [0, 0, 1, 1], [], []>} : vector<2x128xbf16>, vector<128x64xbf16>, vector<2x64xf32> -> vector<2x64xf32>
    %116 = arith.addf %109, %115 : vector<2x64xf32>
    %117 = vector.extract_strided_slice %38 {offsets = [0, 11, 0], sizes = [2, 1, 128], strides = [1, 1, 1]} : vector<2x16x128xf32> to vector<2x1x128xf32>
    %118 = vector.shape_cast %117 : vector<2x1x128xf32> to vector<2x128xf32>
    %119 = arith.truncf %118 : vector<2x128xf32> to vector<2x128xbf16>
    %c11 = arith.constant 11 : index
    %c0_74 = arith.constant 0 : index
    %c0_75 = arith.constant 0 : index
    %120 = vector.load %arg3[%c11, %c0_74, %c0_75] : memref<16x128x64xbf16, #tpu.memory_space<vmem>>, vector<1x128x64xbf16>
    %121 = vector.shape_cast %120 : vector<1x128x64xbf16> to vector<128x64xbf16>
    %cst_76 = arith.constant dense<0.000000e+00> : vector<2x64xf32>
    %122 = tpu.matmul %119, %121, %cst_76 {dimension_numbers = #tpu.dot_dimension_numbers<[1], [0], [0], [1], [0, 0, 1, 1], [], []>} : vector<2x128xbf16>, vector<128x64xbf16>, vector<2x64xf32> -> vector<2x64xf32>
    %123 = arith.addf %116, %122 : vector<2x64xf32>
    %124 = vector.extract_strided_slice %38 {offsets = [0, 12, 0], sizes = [2, 1, 128], strides = [1, 1, 1]} : vector<2x16x128xf32> to vector<2x1x128xf32>
    %125 = vector.shape_cast %124 : vector<2x1x128xf32> to vector<2x128xf32>
    %126 = arith.truncf %125 : vector<2x128xf32> to vector<2x128xbf16>
    %c12 = arith.constant 12 : index
    %c0_77 = arith.constant 0 : index
    %c0_78 = arith.constant 0 : index
    %127 = vector.load %arg3[%c12, %c0_77, %c0_78] : memref<16x128x64xbf16, #tpu.memory_space<vmem>>, vector<1x128x64xbf16>
    %128 = vector.shape_cast %127 : vector<1x128x64xbf16> to vector<128x64xbf16>
    %cst_79 = arith.constant dense<0.000000e+00> : vector<2x64xf32>
    %129 = tpu.matmul %126, %128, %cst_79 {dimension_numbers = #tpu.dot_dimension_numbers<[1], [0], [0], [1], [0, 0, 1, 1], [], []>} : vector<2x128xbf16>, vector<128x64xbf16>, vector<2x64xf32> -> vector<2x64xf32>
    %130 = arith.addf %123, %129 : vector<2x64xf32>
    %131 = vector.extract_strided_slice %38 {offsets = [0, 13, 0], sizes = [2, 1, 128], strides = [1, 1, 1]} : vector<2x16x128xf32> to vector<2x1x128xf32>
    %132 = vector.shape_cast %131 : vector<2x1x128xf32> to vector<2x128xf32>
    %133 = arith.truncf %132 : vector<2x128xf32> to vector<2x128xbf16>
    %c13 = arith.constant 13 : index
    %c0_80 = arith.constant 0 : index
    %c0_81 = arith.constant 0 : index
    %134 = vector.load %arg3[%c13, %c0_80, %c0_81] : memref<16x128x64xbf16, #tpu.memory_space<vmem>>, vector<1x128x64xbf16>
    %135 = vector.shape_cast %134 : vector<1x128x64xbf16> to vector<128x64xbf16>
    %cst_82 = arith.constant dense<0.000000e+00> : vector<2x64xf32>
    %136 = tpu.matmul %133, %135, %cst_82 {dimension_numbers = #tpu.dot_dimension_numbers<[1], [0], [0], [1], [0, 0, 1, 1], [], []>} : vector<2x128xbf16>, vector<128x64xbf16>, vector<2x64xf32> -> vector<2x64xf32>
    %137 = arith.addf %130, %136 : vector<2x64xf32>
    %138 = vector.extract_strided_slice %38 {offsets = [0, 14, 0], sizes = [2, 1, 128], strides = [1, 1, 1]} : vector<2x16x128xf32> to vector<2x1x128xf32>
    %139 = vector.shape_cast %138 : vector<2x1x128xf32> to vector<2x128xf32>
    %140 = arith.truncf %139 : vector<2x128xf32> to vector<2x128xbf16>
    %c14 = arith.constant 14 : index
    %c0_83 = arith.constant 0 : index
    %c0_84 = arith.constant 0 : index
    %141 = vector.load %arg3[%c14, %c0_83, %c0_84] : memref<16x128x64xbf16, #tpu.memory_space<vmem>>, vector<1x128x64xbf16>
    %142 = vector.shape_cast %141 : vector<1x128x64xbf16> to vector<128x64xbf16>
    %cst_85 = arith.constant dense<0.000000e+00> : vector<2x64xf32>
    %143 = tpu.matmul %140, %142, %cst_85 {dimension_numbers = #tpu.dot_dimension_numbers<[1], [0], [0], [1], [0, 0, 1, 1], [], []>} : vector<2x128xbf16>, vector<128x64xbf16>, vector<2x64xf32> -> vector<2x64xf32>
    %144 = arith.addf %137, %143 : vector<2x64xf32>
    %145 = vector.extract_strided_slice %38 {offsets = [0, 15, 0], sizes = [2, 1, 128], strides = [1, 1, 1]} : vector<2x16x128xf32> to vector<2x1x128xf32>
    %146 = vector.shape_cast %145 : vector<2x1x128xf32> to vector<2x128xf32>
    %147 = arith.truncf %146 : vector<2x128xf32> to vector<2x128xbf16>
    %c15 = arith.constant 15 : index
    %c0_86 = arith.constant 0 : index
    %c0_87 = arith.constant 0 : index
    %148 = vector.load %arg3[%c15, %c0_86, %c0_87] : memref<16x128x64xbf16, #tpu.memory_space<vmem>>, vector<1x128x64xbf16>
    %149 = vector.shape_cast %148 : vector<1x128x64xbf16> to vector<128x64xbf16>
    %cst_88 = arith.constant dense<0.000000e+00> : vector<2x64xf32>
    %150 = tpu.matmul %147, %149, %cst_88 {dimension_numbers = #tpu.dot_dimension_numbers<[1], [0], [0], [1], [0, 0, 1, 1], [], []>} : vector<2x128xbf16>, vector<128x64xbf16>, vector<2x64xf32> -> vector<2x64xf32>
    %151 = arith.addf %144, %150 : vector<2x64xf32>
    %c0_89 = arith.constant 0 : index
    %c0_90 = arith.constant 0 : index
    %152 = vector.load %arg7[%c0_89, %c0_90] : memref<1x64xf32, #tpu.memory_space<vmem>>, vector<1x64xf32>
    %153 = vector.broadcast %152 : vector<1x64xf32> to vector<2x64xf32>
    %154 = arith.addf %151, %153 : vector<2x64xf32>
    %cst_91 = arith.constant 0.000000e+00 : f32
    %155 = vector.broadcast %cst_91 : f32 to vector<2x64xf32>
    %156 = arith.maximumf %154, %155 : vector<2x64xf32>
    %c0_92 = arith.constant 0 : index
    %c0_93 = arith.constant 0 : index
    %157 = vector.load %arg4[%c0_92, %c0_93] : memref<64x2xf32, #tpu.memory_space<vmem>>, vector<64x2xf32>
    %cst_94 = arith.constant dense<0.000000e+00> : vector<2x2xf32>
    %158 = tpu.matmul %156, %157, %cst_94 {dimension_numbers = #tpu.dot_dimension_numbers<[1], [0], [0], [1], [0, 0, 1, 1], [], []>} : vector<2x64xf32>, vector<64x2xf32>, vector<2x2xf32> -> vector<2x2xf32>
    %c0_95 = arith.constant 0 : index
    %c0_96 = arith.constant 0 : index
    %159 = vector.load %arg8[%c0_95, %c0_96] : memref<1x2xf32, #tpu.memory_space<vmem>>, vector<1x2xf32>
    %160 = vector.broadcast %159 : vector<1x2xf32> to vector<2x2xf32>
    %161 = arith.addf %158, %160 : vector<2x2xf32>
    %cst_97 = arith.constant 2.000000e+01 : f32
    %162 = vector.broadcast %cst_97 : f32 to vector<2x2xf32>
    %163 = arith.cmpf ogt, %161, %162 : vector<2x2xf32>
    %cst_98 = arith.constant 2.000000e+01 : f32
    %164 = vector.broadcast %cst_98 : f32 to vector<2x2xf32>
    %165 = arith.minimumf %161, %164 : vector<2x2xf32>
    %166 = math.exp %165 : vector<2x2xf32>
    %167 = math.log1p %166 : vector<2x2xf32>
    %168 = arith.select %163, %161, %167 : vector<2x2xi1>, vector<2x2xf32>
    %169 = tpu.iota {dimensions = array<i32: 1>} : vector<2x2xi32>
    %c0_i32 = arith.constant 0 : i32
    %170 = vector.broadcast %c0_i32 : i32 to vector<2x2xi32>
    %171 = arith.cmpi eq, %169, %170 : vector<2x2xi32>
    %cst_99 = arith.constant 1.000000e-03 : f32
    %172 = vector.broadcast %cst_99 : f32 to vector<2x2xf32>
    %173 = arith.addf %168, %172 : vector<2x2xf32>
    %174 = arith.select %171, %161, %173 : vector<2x2xi1>, vector<2x2xf32>
    %c0_100 = arith.constant 0 : index
    %c0_101 = arith.constant 0 : index
    %175 = vector.load %arg9[%c0_100, %c0_101] : memref<2x2xf32, #tpu.memory_space<vmem>>, vector<2x2xf32>
    tpu.vector_store %arg9[%c0_100, %c0_101], %174 {strides = array<i32>} : memref<2x2xf32, #tpu.memory_space<vmem>>, vector<2x2xf32>,
    return
  }
}

</mosaic_0001>

<bundles_post_ra>
// kernel: tile.11
= control target key start
LH: loop header
LB: loop body
LE: loop exit
PB: predicated region body
PF: predicated region fallthrough
CT: control target
= control target key end

     0   :  { %s131_s10 = smov 120   ;;  %s132_s11 = smov 104   ;;  %vm3_vm0 = vcmask 64512   ;;  %vm9_vm1 = vcmask 1048512   ;;  %vm15_vm2 = vcmask 982912   ;;  %vm21_vm3 = vcmask 917312   ;;  %s207_s0 = inlined_call_operand.vmem [shape: f32[16,8], index: 0, kind: input, shape index: {}]   ;;  %s208_s1 = inlined_call_operand.vmem [shape: f32[1,128], index: 1, kind: output, shape index: {}]  }
   0x1   :  { %v101_v0 = vld [vmem:[%s207_s0 + $0xf] sm:$0x1]   ;;  %v103_v1 = vld [vmem:[%s207_s0 + $0xd] sm:$0x1]   ;;  %v105_v2 = vld [vmem:[%s207_s0 + $0xb] sm:$0x1]  }
   0x2   :  { %7 = vrot.lane.b32.xlu0 %v101_v0, %s131_s10  ;;  %19 = vrot.lane.b32.xlu1 %v103_v1, %s132_s11  ;;  %s133_s14 = smov 88   ;;  %v102_v3 = vld [vmem:[%s207_s0 + $0xe] sm:$0x1]   ;;  %v104_v4 = vld [vmem:[%s207_s0 + $0xc] sm:$0x1]   ;;  %s134_s19 = smov 112  }
   0x3   :  { %31 = vrot.lane.b32.xlu2 %v105_v2, %s133_s14  ;;  %s135_s20 = smov 96   ;;  %v106_v5 = vld [vmem:[%s207_s0 + $0xa] sm:$0x1]   ;;  %s136_s23 = smov 80   ;;  %v107_v6 = vld [vmem:[%s207_s0 + $0x9] sm:$0x1]  }
   0x4   :  { %v108_v7 = vld [vmem:[%s207_s0 + $0x8] sm:$0x1]   ;;  %s137_s28 = smov 72   ;;  %s138_s29 = smov 64   ;;  %v109_v8 = vld [vmem:[%s207_s0 + $0x7] sm:$0x1]  }
   0x5   :  { %s139_s3 = smov 56   ;;  %v110_v9 = vld [vmem:[%s207_s0 + $0x6] sm:$0x1]   ;;  %v111_v10 = vld [vmem:[%s207_s0 + $0x5] sm:$0x1]   ;;  %s140_s8 = smov 48  }
   0x6   :  { %s141_s9 = smov 40   ;;  %v112_v11 = vld [vmem:[%s207_s0 + $0x4] sm:$0x1]   ;;  %s142_s12 = smov 32   ;;  %v113_v12 = vld [vmem:[%s207_s0 + $0x3] sm:$0x1]  }
   0x7   :  { %v114_v13 = vld [vmem:[%s207_s0 + $0x2] sm:$0x1]   ;;  %s143_s17 = smov 24   ;;  %s144_s18 = smov 16   ;;  %v115_v14 = vld [vmem:[%s207_s0 + $0x1] sm:$0x1]  }
   0x8   :  { %s145_s21 = smov 8   ;;  %v2_v15 = vld [vmem:[%s207_s0] sm:$0x1]   ;;  %vm27_vm4 = vcmask 851712   ;;  %vm33_vm5 = vcmask 786112   ;;  %vm39_vm6 = vcmask 720512  }
   0x9   :  { %4 = vst.msk [vmem:[#allocation0] sm:$0x1] %vm3_vm0, %v2_v15   ;;  %vm45_vm7 = vcmask 654912   ;;  %vm51_vm8 = vcmask 589312   ;;  %vm57_vm9 = vcmask 523712   ;;  %vm63_vm10 = vcmask 458112  }
   0xa   :  { %13 = vrot.lane.b32.xlu0 %v102_v3, %s134_s19  ;;  %25 = vrot.lane.b32.xlu1 %v104_v4, %s135_s20  ;;  %vm69_vm11 = vcmask 392512   ;;  %vm75_vm12 = vcmask 326912   ;;  %vm81_vm13 = vcmask 261312   ;;  %vm87_vm14 = vcmask 195712  }
   0xb   :  { %37 = vrot.lane.b32.xlu2 %v106_v5, %s136_s23  ;;  %vm93_vm15 = vcmask 130112  }
  0x12   :  { %43 = vrot.lane.b32.xlu0 %v107_v6, %s137_s28  ;;  %49 = vrot.lane.b32.xlu1 %v108_v7, %s138_s29 }
  0x13   :  { %55 = vrot.lane.b32.xlu2 %v109_v8, %s139_s3 }
  0x1a   :  { %61 = vrot.lane.b32.xlu0 %v110_v9, %s140_s8  ;;  %67 = vrot.lane.b32.xlu1 %v111_v10, %s141_s9 }
  0x1b   :  { %73 = vrot.lane.b32.xlu2 %v112_v11, %s142_s12 }
  0x22   :  { %79 = vrot.lane.b32.xlu0 %v113_v12, %s143_s17  ;;  %85 = vrot.lane.b32.xlu1 %v114_v13, %s144_s18 }
  0x23   :  { %91 = vrot.lane.b32.xlu2 %v115_v14, %s145_s21 }
  0x5d   :  { %v32_v16 = vpop.permute.xlu2 %31  }
  0x65   :  { %v38_v17 = vpop.permute.xlu2 %37  }
  0x6d   :  { %v56_v18 = vpop.permute.xlu2 %55  }
  0x74   :  { %v8_v19 = vpop.permute.xlu0 %7   ;;  %v20_v20 = vpop.permute.xlu1 %19  }
  0x75   :  { %10 = vst.msk [vmem:[#allocation0] sm:$0x1] %vm9_vm1, %v8_v19   ;;  %v74_v21 = vpop.permute.xlu2 %73  }
  0x7c   :  { %v14_v22 = vpop.permute.xlu0 %13   ;;  %v26_v23 = vpop.permute.xlu1 %25  }
  0x7d   :  { %16 = vst.msk [vmem:[#allocation0] sm:$0x1] %vm15_vm2, %v14_v22   ;;  %v92_v24 = vpop.permute.xlu2 %91  }
  0x7e   :  { %22 = vst.msk [vmem:[#allocation0] sm:$0x1] %vm21_vm3, %v20_v20  }
  0x7f   :  { %28 = vst.msk [vmem:[#allocation0] sm:$0x1] %vm27_vm4, %v26_v23  }
  0x80   :  { %34 = vst.msk [vmem:[#allocation0] sm:$0x1] %vm33_vm5, %v32_v16  }
  0x81   :  { %40 = vst.msk [vmem:[#allocation0] sm:$0x1] %vm39_vm6, %v38_v17  }
  0x84   :  { %v44_v25 = vpop.permute.xlu0 %43   ;;  %v50_v26 = vpop.permute.xlu1 %49  }
  0x85   :  { %46 = vst.msk [vmem:[#allocation0] sm:$0x1] %vm45_vm7, %v44_v25  }
  0x86   :  { %52 = vst.msk [vmem:[#allocation0] sm:$0x1] %vm51_vm8, %v50_v26  }
  0x87   :  { %58 = vst.msk [vmem:[#allocation0] sm:$0x1] %vm57_vm9, %v56_v18  }
  0x8c   :  { %v62_v27 = vpop.permute.xlu0 %61   ;;  %v68_v28 = vpop.permute.xlu1 %67  }
  0x8d   :  { %64 = vst.msk [vmem:[#allocation0] sm:$0x1] %vm63_vm10, %v62_v27  }
  0x8e   :  { %70 = vst.msk [vmem:[#allocation0] sm:$0x1] %vm69_vm11, %v68_v28  }
  0x8f   :  { %76 = vst.msk [vmem:[#allocation0] sm:$0x1] %vm75_vm12, %v74_v21  }
  0x94   :  { %v80_v29 = vpop.permute.xlu0 %79   ;;  %v86_v30 = vpop.permute.xlu1 %85  }
  0x95   :  { %82 = vst.msk [vmem:[#allocation0] sm:$0x1] %vm81_vm13, %v80_v29  }
  0x96   :  { %88 = vst.msk [vmem:[#allocation0] sm:$0x1] %vm87_vm14, %v86_v30  }
  0x97   :  { %94 = vst.msk [vmem:[#allocation0] sm:$0x1] %vm93_vm15, %v92_v24  }
  0x9e   :  { %v97_v31 = vld [vmem:[#allocation0] sm:$0x1] }
  0x9f   :  { %100 = vst [vmem:[%s208_s1] sm:$0x1] %v97_v31 }

// kernel: _lambda_.1
= control target key start
LH: loop header
LB: loop body
LE: loop exit
PB: predicated region body
PF: predicated region fallthrough
CT: control target
= control target key end

     0   :  { %vm75_vm0 = vcmask 392192   ;;  %v3050_v7 = vmov 0   ;;  %vm158_vm1 = vcmask 1043456   ;;  %vm159_vm2 = vsmask.f32 7938  ;;  %s3727_s1 = inlined_call_operand.vmem [shape: bf16[48,128], index: 1, kind: input, shape index: {}]   ;;  %s3728_s5 = inlined_call_operand.vmem [shape: f32[1,128], index: 5, kind: input, shape index: {}]   ;;  %s3729_s0 = inlined_call_operand.vmem [shape: bf16[2,16,48], index: 0, kind: input, shape index: {}]   ;;  %s3730_s2 = inlined_call_operand.vmem [shape: bf16[3,128,128], index: 2, kind: input, shape index: {}]   ;;  %s3731_s3 = inlined_call_operand.vmem [shape: bf16[16,128,64], index: 3, kind: input, shape index: {}]   ;;  %s3732_s6 = inlined_call_operand.vmem [shape: f32[1,128], index: 6, kind: input, shape index: {}]   ;;  %s3733_s7 = inlined_call_operand.vmem [shape: f32[1,64], index: 7, kind: input, shape index: {}]   ;;  %s3734_s8 = inlined_call_operand.vmem [shape: f32[1,2], index: 8, kind: input, shape index: {}]   ;;  %s3735_s4 = inlined_call_operand.vmem [shape: f32[64,2], index: 4, kind: input, shape index: {}]   ;;  %s3736_s9 = inlined_call_operand.vmem [shape: f32[2,2], index: 9, kind: output, shape index: {}]  }
   0x1   :  { %v2886_v0 = vld [vmem:[%s3727_s1 + $0x10] sm:$0xff]  ;;  %v2885_v1 = vld [vmem:[%s3727_s1 + $0x8] sm:$0xff]  ;;  %v2884_v2 = vld [vmem:[%s3727_s1] sm:$0xff]  ;;  %105 = vst [vmem:[#allocation2] sm:$0xf] %v3050_v7  ;;  %vm165_vm6 = vcmask 1040384  }
   0x2   :  { %87 = vmatpush.bf16.msra.mxu0 %v2886_v0  ;;  %v2882_v3 = vld [vmem:[%s3729_s0] sm:$0xff]  ;;  %v2883_v4 = vld [vmem:[%s3729_s0 + $0x8] sm:$0xff]  ;;  %v2896_v5 = vld [vmem:[%s3730_s2 + $0x38] sm:$0xff]  ;;  %106 = vst [vmem:[#allocation2 + $0x4] sm:$0xf] %v3050_v7  ;;  %vm427_vm9 = vcmask 1042432  }
   0x3   :  { %402 = vmatpush.bf16.msra.mxu2 %v2896_v5  ;;  %v2895_v6 = vld [vmem:[%s3730_s2 + $0x30] sm:$0xff]  ;;  %107 = vst [vmem:[#allocation2 + $0x8] sm:$0x1] %v3050_v7  ;;  %v2912_v8 = vld [vmem:[%s3730_s2 + $0xb8] sm:$0xff]  ;;  %v2894_v9 = vld [vmem:[%s3730_s2 + $0x28] sm:$0xff]  ;;  %vm428_vm10 = vcmask 1046532  }
   0x4   :  { %108 = vst [vmem:[#allocation2 + $0xc] sm:$0xf] %v3050_v7  ;;  %517 = vmatpush.bf16.msra.mxu3 %v2912_v8  ;;  %v2904_v10 = vld [vmem:[%s3730_s2 + $0x78] sm:$0xff]  ;;  %v2911_v11 = vld [vmem:[%s3730_s2 + $0xb0] sm:$0xff]  ;;  %v2893_v12 = vld [vmem:[%s3730_s2 + $0x20] sm:$0xff]  ;;  %vm592_vm15 = vcmask 1041409  }
   0x5   :  { %109 = vst [vmem:[#allocation2 + $0x10] sm:$0xf] %v3050_v7  ;;  %323 = vmatpush.bf16.msra.mxu1 %v2904_v10  ;;  %v2903_v13 = vld [vmem:[%s3730_s2 + $0x70] sm:$0xff]  ;;  %v2910_v14 = vld [vmem:[%s3730_s2 + $0xa8] sm:$0xff]  ;;  %v2892_v15 = vld [vmem:[%s3730_s2 + $0x18] sm:$0xff] }
   0x6   :  { %88 = vmatpush.bf16.msra.mxu0 %v2885_v1  ;;  %110 = vst [vmem:[#allocation2 + $0x14] sm:$0x1] %v3050_v7  ;;  %v2902_v16 = vld [vmem:[%s3730_s2 + $0x68] sm:$0xff]  ;;  %v2909_v17 = vld [vmem:[%s3730_s2 + $0xa0] sm:$0xff]  ;;  %v2891_v18 = vld [vmem:[%s3730_s2 + $0x10] sm:$0xff] }
   0x7   :  { %403 = vmatpush.bf16.msra.mxu2 %v2895_v6  ;;  %v2901_v19 = vld [vmem:[%s3730_s2 + $0x60] sm:$0xff]  ;;  %v2908_v20 = vld [vmem:[%s3730_s2 + $0x98] sm:$0xff]  ;;  %v2890_v21 = vld [vmem:[%s3730_s2 + $0x8] sm:$0xff]  ;;  %vm115_vm4 = vsmask.f32 256 }
   0x8   :  { %518 = vmatpush.bf16.msra.mxu3 %v2911_v11  ;;  %v2900_v22 = vld [vmem:[%s3730_s2 + $0x58] sm:$0xff]  ;;  %v2907_v23 = vld [vmem:[%s3730_s2 + $0x90] sm:$0xff]  ;;  %v2889_v24 = vld [vmem:[%s3730_s2] sm:$0xff]  ;;  %vm116_vm5 = vsmask.f32 4368 }
   0x9   :  { %324 = vmatpush.bf16.msra.mxu1 %v2903_v13  ;;  %v3042_v25 = vld [vmem:[%s3728_s5] ss:$0 sm:$0xff]  ;;  %v2899_v26 = vld [vmem:[%s3730_s2 + $0x50] sm:$0xff]  ;;  %v2906_v27 = vld [vmem:[%s3730_s2 + $0x88] sm:$0xff]  ;;  %vm199_vm12 = vsmask.f32 3328 }
   0xa   :  { %89 = vmatpush.bf16.msra.mxu0 %v2884_v2  ;;  %v2898_v31 = vld [vmem:[%s3730_s2 + $0x48] sm:$0xff]  ;;  %v2905_v32 = vld [vmem:[%s3730_s2 + $0x80] sm:$0xff]  ;;  %vm3191_vm3 = vmand %vm158_vm1, %vm159_vm2  ;;  %vm200_vm13 = vsmask.f32 7440 }
   0xb   :  { %404 = vmatpush.bf16.msra.mxu2 %v2894_v9  ;;  %v2897_v35 = vld [vmem:[%s3730_s2 + $0x40] sm:$0xff]  ;;  %vm3197_vm7 = vmor %vm115_vm4, %vm116_vm5  ;;  %v167_v53 = vld [vmem:[#allocation2 + $0x8] sm:$0x1] }
   0xc   :  { %519 = vmatpush.bf16.msra.mxu3 %v2910_v14  ;;  %v161_v41 = vld [vmem:[#allocation2] sm:$0xf]  ;;  %vm3201_vm8 = vmand %vm165_vm6, %vm115_vm4  ;;  %v170_v5 = vld [vmem:[#allocation2 + $0xc] sm:$0xf]  ;;  %vm1963_vm4 = vcmask 9216  }
   0xd   :  { %1989 = vmatmul.msk.bf16.vlgmr.msra.gmra.mxu0 %vm75_vm0, %v2882_v3  ;;  %325 = vmatpush.bf16.msra.mxu1 %v2902_v16  ;;  %vm3212_vm11 = vmor %vm427_vm9, %vm428_vm10  ;;  %v2920_v13 = vld [vmem:[%s3731_s3 + $0x38] sm:$0xff]  ;;  %v2917_v48 = vld [vmem:[%s3731_s3 + $0x20] sm:$0xff] }
   0xe   :  { %v2936_v14 = vld [vmem:[%s3731_s3 + $0xb8] sm:$0xff]  ;;  %vm3246_vm14 = vmor %vm199_vm12, %vm200_vm13  ;;  %v2915_v11 = vld [vmem:[%s3731_s3 + $0x10] sm:$0xff] }
   0xf   :  { %405 = vmatpush.bf16.msra.mxu2 %v2893_v12  ;;  %v2928_v12 = vld [vmem:[%s3731_s3 + $0x78] sm:$0xff] }
  0x10   :  { %520 = vmatpush.bf16.msra.mxu3 %v2909_v17  ;;  %644 = vmatpush.bf16.msrb.mxu0 %v2928_v12  ;;  %v2932_v12 = vld [vmem:[%s3731_s3 + $0x98] sm:$0xff] }
  0x11   :  { %326 = vmatpush.bf16.msra.mxu1 %v2901_v19 }
  0x13   :  { %406 = vmatpush.bf16.msra.mxu2 %v2892_v15 }
  0x14   :  { %521 = vmatpush.bf16.msra.mxu3 %v2908_v20  ;;  %v2944_v20 = vld [vmem:[%s3731_s3 + $0xf8] sm:$0xff] }
  0x15   :  { %327 = vmatpush.bf16.msra.mxu1 %v2900_v22 }
  0x17   :  { %407 = vmatpush.bf16.msra.mxu2 %v2891_v18 }
  0x18   :  { %522 = vmatpush.bf16.msra.mxu3 %v2907_v23 }
  0x19   :  { %328 = vmatpush.bf16.msra.mxu1 %v2899_v26 }
  0x1b   :  { %408 = vmatpush.bf16.msra.mxu2 %v2890_v21 }
  0x1c   :  { %523 = vmatpush.bf16.msra.mxu3 %v2906_v27 }
  0x1d   :  { %1990 = vmatmul.msk.bf16.gmra.mxu0 %vm75_vm0, %v2883_v4  ;;  %329 = vmatpush.bf16.msra.mxu1 %v2898_v31  ;;  %vm1920_vm0 = vcmask 523264  }
  0x1f   :  { %409 = vmatpush.bf16.msra.mxu2 %v2889_v24 }
  0x20   :  { %524 = vmatpush.bf16.msra.mxu3 %v2905_v32 }
  0x21   :  { %330 = vmatpush.bf16.msra.mxu1 %v2897_v35  ;;  %v2943_v35 = vld [vmem:[%s3731_s3 + $0xf0] sm:$0xff] }
  0x23   :  { %792 = vmatpush.bf16.msrb.mxu2 %v2936_v14 }
  0x24   :  { %876 = vmatpush.bf16.msrb.mxu3 %v2944_v20 }
  0x25   :  { %709 = vmatpush.bf16.msrb.mxu1 %v2920_v13 }
  0x28   :  { %877 = vmatpush.bf16.msrb.mxu3 %v2943_v35 }
  0x8a   :  { %v91_v28 = vpop.f32.mrf.mxu0 }
  0x8b   :  { %v92_v29 = vadd.f32 %v3042_v25, %v91_v28  ;;  %v2927_v28 = vld [vmem:[%s3731_s3 + $0x70] sm:$0xff] }
  0x8c   :  { %645 = vmatpush.bf16.msrb.mxu0 %v2927_v28 }
  0x8d   :  { %v101_v30 = vmax.f32 %v92_v29, 0.0  ;;  %v2919_v29 = vld [vmem:[%s3731_s3 + $0x30] sm:$0xff] }
  0x8e   :  { %710 = vmatpush.bf16.msrb.mxu1 %v2919_v29 }
  0x8f   :  { %v111_v33 = vpack.c.bf16 %v101_v30, %v101_v30 }
  0x91   :  { %v119_v34 = vshrl.u32 %v111_v33, 16  ;;  %v122_v38 = vshll.u32 %v111_v33, 16 }
  0x92   :  { %v93_v36 = vpop.f32.mrf.mxu0 }
  0x93   :  { %v121_v37 = vrot.slane %v119_v34, 7  ;;  %v94_v39 = vadd.f32 %v3042_v25, %v93_v36  ;;  %v2935_v34 = vld [vmem:[%s3731_s3 + $0xb0] sm:$0xff] }
  0x94   :  { %793 = vmatpush.bf16.msrb.mxu2 %v2935_v34 }
  0x95   :  { %v124_v42 = vor.u32 %v122_v38, %v121_v37  ;;  %v102_v43 = vmax.f32 %v94_v39, 0.0  ;;  %v125_v54 = vrot.slane %v121_v37, 4  ;;  %v2922_v38 = vld [vmem:[%s3731_s3 + $0x48] sm:$0xff] }
  0x97   :  { %v162_v44 = vsel %vm3191_vm3, %v124_v42, %v161_v41  ;;  %v112_v45 = vpack.c.bf16 %v102_v43, %v102_v43  ;;  %v174_v41 = vld [vmem:[#allocation2 + $0x14] sm:$0x1] }
  0x98   :  { %163 = vst [vmem:[#allocation2] sm:$0xf] %v162_v44 }
  0x99   :  { %v127_v46 = vshrl.u32 %v112_v45, 16  ;;  %v130_v50 = vshll.u32 %v112_v45, 16  ;;  %v2926_v45 = vld [vmem:[%s3731_s3 + $0x68] sm:$0xff] }
  0x9a   :  { %v96_v47 = vpop.f32.mrf.mxu0  ;;  %646 = vmatpush.bf16.msrb.mxu0 %v2926_v45  ;;  %v2914_v45 = vld [vmem:[%s3731_s3 + $0x8] sm:$0xff] }
  0x9b   :  { %v129_v49 = vrot.slane %v127_v46, 7  ;;  %v97_v51 = vadd.f32 %v3042_v25, %v96_v47  ;;  %v2918_v46 = vld [vmem:[%s3731_s3 + $0x28] sm:$0xff] }
  0x9c   :  { %711 = vmatpush.bf16.msrb.mxu1 %v2918_v46  ;;  %v2930_v46 = vld [vmem:[%s3731_s3 + $0x88] sm:$0xff] }
  0x9d   :  { %v132_v55 = vor.u32 %v130_v50, %v129_v49  ;;  %v134_v56 = vrot.slane %v129_v49, 4  ;;  %v103_v57 = vmax.f32 %v97_v51, 0.0 }
  0x9f   :  { %v133_v58 = vsel %vm3197_vm7, %v125_v54, %v132_v55  ;;  %v168_v59 = vsel %vm3201_vm8, %v134_v56, %v167_v53  ;;  %v113_v60 = vpack.c.bf16 %v103_v57, %v103_v57  ;;  %v177_v61 = vld [vmem:[#allocation2] sm:$0xf]  ;;  %v2934_v55 = vld [vmem:[%s3731_s3 + $0xa8] sm:$0xff] }
  0xa0   :  { %164 = vst [vmem:[#allocation2 + $0x4] sm:$0xf] %v133_v58  ;;  %v203_v62 = vshrl.u32 %v177_v61, 16  ;;  %v206_v63 = vshll.u32 %v177_v61, 16  ;;  %v421_v6 = vld [vmem:[#allocation2] sm:$0xe]  ;;  %794 = vmatpush.bf16.msrb.mxu2 %v2934_v55  ;;  %712 = vmatpush.bf16.msrb.mxu1 %v2917_v48 }
  0xa1   :  { %169 = vst [vmem:[#allocation2 + $0x8] sm:$0x1] %v168_v59  ;;  %v136_v0 = vshrl.u32 %v113_v60, 16  ;;  %v139_v3 = vshll.u32 %v113_v60, 16  ;;  %v2079_v19 = vrot.slane %v421_v6, 9  ;;  %v2942_v56 = vld [vmem:[%s3731_s3 + $0xe8] sm:$0xff] }
  0xa2   :  { %v98_v1 = vpop.f32.mrf.mxu0  ;;  %v205_v7 = vrot.slane %v203_v62, 4  ;;  %v208_v8 = vrot.slane %v206_v63, 5  ;;  %878 = vmatpush.bf16.msrb.mxu3 %v2942_v56  ;;  %v2960_v55 = vld [vmem:[%s3731_s3 + $0x178] sm:$0xff]  ;;  %v2974_v48 = vld [vmem:[%s3731_s3 + $0x1e8] sm:$0xff] }
  0xa3   :  { %v3209_v2 = vrot.slane %v136_v0, 7  ;;  %v99_v4 = vadd.f32 %v3042_v25, %v98_v1  ;;  %v2925_v0 = vld [vmem:[%s3731_s3 + $0x60] sm:$0xff]  ;;  %v2968_v56 = vld [vmem:[%s3731_s3 + $0x1b8] sm:$0xff] }
  0xa4   :  { %v209_v23 = vor.u32 %v208_v8, %v205_v7  ;;  %647 = vmatpush.bf16.msrb.mxu0 %v2925_v0  ;;  %v2966_v0 = vld [vmem:[%s3731_s3 + $0x1a8] sm:$0xff] }
  0xa5   :  { %v141_v9 = vor.u32 %v139_v3, %v3209_v2  ;;  %v104_v10 = vmax.f32 %v99_v4, 0.0  ;;  %v142_v40 = vrot.slane %v3209_v2, 4  ;;  %v2933_v3 = vld [vmem:[%s3731_s3 + $0xa0] sm:$0xff] }
  0xa6   :  { %v210_v44 = vrot.slane %v209_v23, 4  ;;  %v2941_v4 = vld [vmem:[%s3731_s3 + $0xe0] sm:$0xff]  ;;  %795 = vmatpush.bf16.msrb.mxu2 %v2933_v3 }
  0xa7   :  { %v171_v15 = vsel %vm3191_vm3, %v141_v9, %v170_v5  ;;  %v114_v16 = vpack.c.bf16 %v104_v10, %v104_v10  ;;  %v2887_v17 = vld [vmem:[#allocation2] sm:$0xff]  ;;  %v2924_v9 = vld [vmem:[%s3731_s3 + $0x58] sm:$0xff]  ;;  %879 = vmatpush.bf16.msrb.mxu3 %v2941_v4 }
  0xa8   :  { %v178_v18 = vld [vmem:[#allocation2 + $0x4] sm:$0xf]  ;;  %172 = vst [vmem:[#allocation2 + $0xc] sm:$0xf] %v171_v15  ;;  %v197_v21 = vld [vmem:[#allocation2 + $0x8] sm:$0x1]  ;;  %410 = vmatmul.bf16.vlgmr.msra.gmra.mxu2 %v2887_v17  ;;  %648 = vmatpush.bf16.msrb.mxu0 %v2924_v9 }
  0xa9   :  { %v432_v22 = vrot.slane %v178_v18, 5  ;;  %v212_v24 = vshll.u32 %v178_v18, 16  ;;  %v144_v25 = vshrl.u32 %v114_v16, 16  ;;  %v435_v26 = vrot.slane %v197_v21, 5  ;;  %v2916_v10 = vld [vmem:[%s3731_s3 + $0x18] sm:$0xff]  ;;  %v2973_v3 = vld [vmem:[%s3731_s3 + $0x1e0] sm:$0xff] }
  0xaa   :  { %v216_v27 = vshrl.u32 %v178_v18, 16  ;;  %v222_v33 = vshll.u32 %v197_v21, 16  ;;  %v147_v37 = vshll.u32 %v114_v16, 16  ;;  %v2940_v16 = vld [vmem:[%s3731_s3 + $0xd8] sm:$0xff]  ;;  %713 = vmatpush.bf16.msrb.mxu1 %v2916_v10  ;;  %796 = vmatpush.bf16.msrb.mxu2 %v2932_v12  ;;  %v2955_v9 = vld [vmem:[%s3731_s3 + $0x150] sm:$0xff] }
  0xab   :  { %v433_v30 = vsel %vm3212_vm11, %v2079_v19, %v432_v22  ;;  %v434_v31 = vrot.slane %v432_v22, 4  ;;  %v214_v32 = vrot.slane %v212_v24, 5  ;;  %v146_v36 = vrot.slane %v144_v25, 7  ;;  %v2923_v22 = vld [vmem:[%s3731_s3 + $0x50] sm:$0xff]  ;;  %880 = vmatpush.bf16.msrb.mxu3 %v2940_v16  ;;  %v2948_v4 = vld [vmem:[%s3731_s3 + $0x118] sm:$0xff]  ;;  %v2962_v16 = vld [vmem:[%s3731_s3 + $0x188] sm:$0xff] }
  0xac   :  { %v218_v39 = vrot.slane %v216_v27, 4  ;;  %v461_v43 = vunpack.c.l.b16 %v433_v30  ;;  %v224_v54 = vrot.slane %v222_v33, 5  ;;  %649 = vmatpush.bf16.msrb.mxu0 %v2923_v22  ;;  %v2963_v10 = vld [vmem:[%s3731_s3 + $0x190] sm:$0xff]  ;;  %v2969_v22 = vld [vmem:[%s3731_s3 + $0x1c0] sm:$0xff] }
  0xad   :  { %v436_v42 = vsel %vm3212_vm11, %v434_v31, %v435_v26  ;;  %v149_v47 = vor.u32 %v147_v37, %v146_v36  ;;  %v151_v49 = vrot.slane %v146_v36, 4  ;;  %v215_v53 = vsel %vm3246_vm14, %v210_v44, %v214_v32  ;;  %v2939_v44 = vld [vmem:[%s3731_s3 + $0xd0] sm:$0xff] }
  0xae   :  { %v462_v50 = vunpack.c.l.b16 %v436_v42  ;;  %v219_v51 = vor.u32 %v218_v39, %v214_v32  ;;  %v267_v1 = vunpack.c.l.b16 %v215_v53  ;;  %714 = vmatpush.bf16.msrb.mxu1 %v2915_v11  ;;  %v2929_v53 = vld [vmem:[%s3731_s3 + $0x80] sm:$0xff]  ;;  %v2971_v12 = vld [vmem:[%s3731_s3 + $0x1d0] sm:$0xff] }
  0xaf   :  { %v150_v57 = vsel %vm3197_vm7, %v142_v40, %v149_v47  ;;  %v175_v58 = vsel %vm3201_vm8, %v151_v49, %v174_v41  ;;  %v179_v61 = vld [vmem:[#allocation2 + $0xc] sm:$0xf]  ;;  %881 = vmatpush.bf16.msrb.mxu3 %v2939_v44  ;;  %v2921_v49 = vld [vmem:[%s3731_s3 + $0x40] sm:$0xff] }
  0xb0   :  { %v465_v59 = vpack.c.b16 %v462_v50, %v461_v43  ;;  %v220_v60 = vrot.slane %v219_v51, 4  ;;  %173 = vst [vmem:[#allocation2 + $0x10] sm:$0xf] %v150_v57  ;;  %v227_v62 = vshrl.u32 %v179_v61, 16  ;;  %v230_v63 = vshll.u32 %v179_v61, 16  ;;  %v2931_v43 = vld [vmem:[%s3731_s3 + $0x90] sm:$0xff]  ;;  %650 = vmatpush.bf16.msrb.mxu0 %v2922_v38 }
  0xb1   :  { %176 = vst [vmem:[#allocation2 + $0x14] sm:$0x1] %v175_v58  ;;  %v422_v6 = vld [vmem:[#allocation2 + $0xc] sm:$0xe]  ;;  %797 = vmatpush.bf16.msrb.mxu2 %v2931_v43  ;;  %v2952_v50 = vld [vmem:[%s3731_s3 + $0x138] sm:$0xff]  ;;  %v2913_v51 = vld [vmem:[%s3731_s3] sm:$0xff] }
  0xb2   :  { %525 = vmatmul.bf16.vlgmr.msra.gmra.mxu3 %v465_v59  ;;  %v225_v52 = vsel %vm3246_vm14, %v220_v60, %v224_v54  ;;  %v229_v7 = vrot.slane %v227_v62, 4  ;;  %v232_v8 = vrot.slane %v230_v63, 5  ;;  %v2080_v15 = vrot.slane %v422_v6, 9  ;;  %v2938_v47 = vld [vmem:[%s3731_s3 + $0xc8] sm:$0xff]  ;;  %715 = vmatpush.bf16.msrb.mxu1 %v2914_v45  ;;  %v2937_v54 = vld [vmem:[%s3731_s3 + $0xc0] sm:$0xff]  ;;  %v2976_v57 = vld [vmem:[%s3731_s3 + $0x1f8] sm:$0xff] }
  0xb3   :  { %v268_v2 = vunpack.c.l.b16 %v225_v52  ;;  %882 = vmatpush.bf16.msrb.mxu3 %v2938_v47  ;;  %v2951_v58 = vld [vmem:[%s3731_s3 + $0x130] sm:$0xff]  ;;  %v2950_v62 = vld [vmem:[%s3731_s3 + $0x128] sm:$0xff]  ;;  %v2949_v52 = vld [vmem:[%s3731_s3 + $0x120] sm:$0xff] }
  0xb4   :  { %v233_v19 = vor.u32 %v232_v8, %v229_v7  ;;  %651 = vmatpush.bf16.msrb.mxu0 %v2921_v49  ;;  %v2959_v59 = vld [vmem:[%s3731_s3 + $0x170] sm:$0xff]  ;;  %v2958_v63 = vld [vmem:[%s3731_s3 + $0x168] sm:$0xff]  ;;  %v2964_v6 = vld [vmem:[%s3731_s3 + $0x198] sm:$0xff] }
  0xb5   :  { %v271_v5 = vpack.c.b16 %v268_v2, %v267_v1  ;;  %798 = vmatpush.bf16.msrb.mxu2 %v2930_v46  ;;  %v2967_v60 = vld [vmem:[%s3731_s3 + $0x1b0] sm:$0xff]  ;;  %v2957_v1 = vld [vmem:[%s3731_s3 + $0x160] sm:$0xff]  ;;  %v2972_v7 = vld [vmem:[%s3731_s3 + $0x1d8] sm:$0xff] }
  0xb6   :  { %v234_v30 = vrot.slane %v233_v19, 4  ;;  %716 = vmatpush.bf16.msrb.mxu1 %v2913_v51  ;;  %v2975_v61 = vld [vmem:[%s3731_s3 + $0x1f0] sm:$0xff]  ;;  %v2965_v2 = vld [vmem:[%s3731_s3 + $0x1a0] sm:$0xff]  ;;  %v2984_v38 = vld [vmem:[%s3731_s3 + $0x238] sm:$0xff] }
  0xb7   :  { %331 = vmatmul.bf16.vlgmr.msra.gmra.mxu1 %v271_v5  ;;  %v2888_v13 = vld [vmem:[#allocation2 + $0xc] sm:$0xff]  ;;  %883 = vmatpush.bf16.msrb.mxu3 %v2937_v54  ;;  %v2956_v5 = vld [vmem:[%s3731_s3 + $0x158] sm:$0xff] }
  0xb8   :  { %v180_v14 = vld [vmem:[#allocation2 + $0x10] sm:$0xf]  ;;  %v198_v17 = vld [vmem:[#allocation2 + $0x14] sm:$0x1]  ;;  %415 = vmatmul.bf16.gmra.mxu2 %v2888_v13  ;;  %960 = vmatpush.bf16.msra.mxu0 %v2952_v50  ;;  %v2946_v13 = vld [vmem:[%s3731_s3 + $0x108] sm:$0xff] }
  0xb9   :  { %v439_v18 = vrot.slane %v180_v14, 5  ;;  %v236_v20 = vshll.u32 %v180_v14, 16  ;;  %v240_v21 = vshrl.u32 %v180_v14, 16  ;;  %v442_v23 = vrot.slane %v198_v17, 5  ;;  %799 = vmatpush.bf16.msrb.mxu2 %v2929_v53  ;;  %v2947_v8 = vld [vmem:[%s3731_s3 + $0x110] sm:$0xff] }
  0xba   :  { %v246_v24 = vshll.u32 %v198_v17, 16  ;;  %1044 = vmatpush.bf16.msra.mxu1 %v2960_v55  ;;  %v2970_v17 = vld [vmem:[%s3731_s3 + $0x1c8] sm:$0xff] }
  0xbb   :  { %v440_v25 = vsel %vm3212_vm11, %v2080_v15, %v439_v18  ;;  %v441_v26 = vrot.slane %v439_v18, 4  ;;  %v238_v27 = vrot.slane %v236_v20, 5  ;;  %v242_v28 = vrot.slane %v240_v21, 4  ;;  %1212 = vmatpush.bf16.msra.mxu3 %v2976_v57  ;;  %v2954_v15 = vld [vmem:[%s3731_s3 + $0x148] sm:$0xff]  ;;  %v2945_v18 = vld [vmem:[%s3731_s3 + $0x100] sm:$0xff] }
  0xbc   :  { %v463_v32 = vunpack.c.l.b16 %v440_v25  ;;  %v248_v36 = vrot.slane %v246_v24, 5  ;;  %961 = vmatpush.bf16.msra.mxu0 %v2951_v58  ;;  %v2953_v20 = vld [vmem:[%s3731_s3 + $0x140] sm:$0xff] }
  0xbd   :  { %v443_v29 = vsel %vm3212_vm11, %v441_v26, %v442_v23  ;;  %v243_v31 = vor.u32 %v242_v28, %v238_v27  ;;  %v239_v34 = vsel %vm3246_vm14, %v234_v30, %v238_v27  ;;  %1128 = vmatpush.bf16.msra.mxu2 %v2968_v56  ;;  %v2961_v21 = vld [vmem:[%s3731_s3 + $0x180] sm:$0xff]  ;;  %v2992_v56 = vld [vmem:[%s3731_s3 + $0x278] sm:$0xff] }
  0xbe   :  { %v464_v33 = vunpack.c.l.b16 %v443_v29  ;;  %v269_v40 = vunpack.c.l.b16 %v239_v34  ;;  %1045 = vmatpush.bf16.msra.mxu1 %v2959_v59  ;;  %v3440_v27 = vld [vmem:[%s3732_s6] ss:$0 sm:$0xff] }
  0xbf   :  { %v244_v35 = vrot.slane %v243_v31, 4  ;;  %1213 = vmatpush.bf16.msra.mxu3 %v2975_v61  ;;  %v3008_v61 = vld [vmem:[%s3731_s3 + $0x2f8] sm:$0xff] }
  0xc0   :  { %v466_v37 = vpack.c.b16 %v464_v33, %v463_v32  ;;  %962 = vmatpush.bf16.msra.mxu0 %v2950_v62 }
  0xc1   :  { %v249_v39 = vsel %vm3246_vm14, %v244_v35, %v248_v36  ;;  %1129 = vmatpush.bf16.msra.mxu2 %v2967_v60  ;;  %v3000_v60 = vld [vmem:[%s3731_s3 + $0x2b8] sm:$0xff] }
  0xc2   :  { %530 = vmatmul.bf16.gmra.mxu3 %v466_v37  ;;  %v270_v41 = vunpack.c.l.b16 %v249_v39  ;;  %1046 = vmatpush.bf16.msra.mxu1 %v2958_v63 }
  0xc3   :  { %1214 = vmatpush.bf16.msra.mxu3 %v2974_v48 }
  0xc4   :  { %v272_v42 = vpack.c.b16 %v270_v41, %v269_v40  ;;  %963 = vmatpush.bf16.msra.mxu0 %v2949_v52 }
  0xc5   :  { %1130 = vmatpush.bf16.msra.mxu2 %v2966_v0  ;;  %v2983_v0 = vld [vmem:[%s3731_s3 + $0x230] sm:$0xff] }
  0xc6   :  { %1047 = vmatpush.bf16.msra.mxu1 %v2957_v1  ;;  %v2991_v1 = vld [vmem:[%s3731_s3 + $0x270] sm:$0xff] }
  0xc7   :  { %336 = vmatmul.bf16.gmra.mxu1 %v272_v42  ;;  %1215 = vmatpush.bf16.msra.mxu3 %v2973_v3  ;;  %v2999_v3 = vld [vmem:[%s3731_s3 + $0x2b0] sm:$0xff] }
  0xc8   :  { %964 = vmatpush.bf16.msra.mxu0 %v2948_v4  ;;  %v3007_v4 = vld [vmem:[%s3731_s3 + $0x2f0] sm:$0xff] }
  0xc9   :  { %1131 = vmatpush.bf16.msra.mxu2 %v2965_v2 }
  0xca   :  { %1048 = vmatpush.bf16.msra.mxu1 %v2956_v5  ;;  %v2982_v5 = vld [vmem:[%s3731_s3 + $0x228] sm:$0xff] }
  0xcb   :  { %1216 = vmatpush.bf16.msra.mxu3 %v2972_v7  ;;  %v2990_v7 = vld [vmem:[%s3731_s3 + $0x268] sm:$0xff] }
  0xcc   :  { %965 = vmatpush.bf16.msra.mxu0 %v2947_v8 }
  0xcd   :  { %1132 = vmatpush.bf16.msra.mxu2 %v2964_v6 }
  0xce   :  { %1049 = vmatpush.bf16.msra.mxu1 %v2955_v9  ;;  %v2998_v9 = vld [vmem:[%s3731_s3 + $0x2a8] sm:$0xff] }
  0xcf   :  { %1217 = vmatpush.bf16.msra.mxu3 %v2971_v12 }
  0xd0   :  { %966 = vmatpush.bf16.msra.mxu0 %v2946_v13  ;;  %v2981_v13 = vld [vmem:[%s3731_s3 + $0x220] sm:$0xff] }
  0xd1   :  { %1133 = vmatpush.bf16.msra.mxu2 %v2963_v10  ;;  %v3006_v10 = vld [vmem:[%s3731_s3 + $0x2e8] sm:$0xff] }
  0xd2   :  { %1050 = vmatpush.bf16.msra.mxu1 %v2954_v15 }
  0xd3   :  { %1218 = vmatpush.bf16.msra.mxu3 %v2970_v17 }
  0xd4   :  { %967 = vmatpush.bf16.msra.mxu0 %v2945_v18 }
  0xd5   :  { %1134 = vmatpush.bf16.msra.mxu2 %v2962_v16 }
  0xd6   :  { %1051 = vmatpush.bf16.msra.mxu1 %v2953_v20 }
  0xd7   :  { %1219 = vmatpush.bf16.msra.mxu3 %v2969_v22  ;;  %v2997_v22 = vld [vmem:[%s3731_s3 + $0x2a0] sm:$0xff] }
  0xd9   :  { %1135 = vmatpush.bf16.msra.mxu2 %v2961_v21 }
 0x12b   :  { %v411_v14 = vpop.f32.mrf.mxu2 }
 0x133   :  { %v413_v25 = vpop.f32.mrf.mxu2 }
 0x134   :  { %v332_v19 = vpop.f32.mrf.mxu1 }
 0x135   :  { %v526_v23 = vpop.f32.mrf.mxu3  ;;  %v412_v24 = vadd.f32 %v411_v14, %v332_v19  ;;  %v2989_v19 = vld [vmem:[%s3731_s3 + $0x260] sm:$0xff] }
 0x137   :  { %v536_v26 = vadd.f32 %v526_v23, %v412_v24  ;;  %v3005_v23 = vld [vmem:[%s3731_s3 + $0x2e0] sm:$0xff] }
 0x139   :  { %v544_v30 = vadd.f32 %v3440_v27, %v536_v26 }
 0x13b   :  { %v548_v31 = vmax.f32 %v544_v30, 0.0  ;;  %v416_v32 = vpop.f32.mrf.mxu2 }
 0x13c   :  { %v334_v28 = vpop.f32.mrf.mxu1 }
 0x13d   :  { %v528_v29 = vpop.f32.mrf.mxu3  ;;  %v552_v36 = vpack.c.bf16 %v548_v31, %v548_v31  ;;  %v414_v2 = vadd.f32 %v413_v25, %v334_v28 }
 0x13f   :  { %v3444_v40 = vunpack.c.l.b16 %v552_v36  ;;  %v537_v8 = vadd.f32 %v528_v29, %v414_v2  ;;  %v2980_v29 = vld [vmem:[%s3731_s3 + $0x218] sm:$0xff] }
 0x140   :  { %v2996_v36 = vld [vmem:[%s3731_s3 + $0x298] sm:$0xff] }
 0x141   :  { %v591_v43 = vrot.slane %v3444_v40, 1  ;;  %v739_v46 = vrot.slane %v3444_v40, 2  ;;  %v823_v50 = vrot.slane %v3444_v40, 3  ;;  %v907_v16 = vrot.slane %v3444_v40, 4 }
 0x142   :  { %v991_v20 = vrot.slane %v3444_v40, 5  ;;  %v545_v21 = vadd.f32 %v3440_v27, %v537_v8  ;;  %v1075_v25 = vrot.slane %v3444_v40, 6  ;;  %v1159_v26 = vrot.slane %v3444_v40, 7  ;;  %v3023_v8 = vld [vmem:[%s3731_s3 + $0x370] sm:$0xff] }
 0x143   :  { %v418_v62 = vpop.f32.mrf.mxu2 }
 0x144   :  { %v337_v33 = vpop.f32.mrf.mxu1 }
 0x145   :  { %v417_v34 = vadd.f32 %v416_v32, %v337_v33  ;;  %v531_v35 = vpop.f32.mrf.mxu3  ;;  %v549_v33 = vmax.f32 %v545_v21, 0.0  ;;  %v3037_v21 = vld [vmem:[%s3731_s3 + $0x3e0] sm:$0xff] }
 0x147   :  { %v538_v37 = vadd.f32 %v531_v35, %v417_v34  ;;  %v2988_v35 = vld [vmem:[%s3731_s3 + $0x258] sm:$0xff] }
 0x149   :  { %v546_v39 = vadd.f32 %v3440_v27, %v538_v37 }
 0x14b   :  { %v550_v41 = vmax.f32 %v546_v39, 0.0 }
 0x14c   :  { %v339_v53 = vpop.f32.mrf.mxu1 }
 0x14d   :  { %v553_v42 = vpack.c.bf16 %v550_v41, %v550_v41  ;;  %v419_v48 = vadd.f32 %v418_v62, %v339_v53  ;;  %v533_v52 = vpop.f32.mrf.mxu3  ;;  %v2977_v53 = vld [vmem:[%s3731_s3 + $0x200] sm:$0xff]  ;;  %v3024_v62 = vld [vmem:[%s3731_s3 + $0x378] sm:$0xff] }
 0x14f   :  { %v3446_v11 = vunpack.c.l.b16 %v553_v42  ;;  %v539_v6 = vadd.f32 %v533_v52, %v419_v48  ;;  %v2979_v42 = vld [vmem:[%s3731_s3 + $0x210] sm:$0xff]  ;;  %v3040_v48 = vld [vmem:[%s3731_s3 + $0x3f8] sm:$0xff] }
 0x151   :  { %v593_v44 = vsel %vm592_vm15, %v3446_v11, %v591_v43  ;;  %v657_v45 = vrot.slane %v3446_v11, 7  ;;  %v740_v47 = vrot.slane %v3446_v11, 1  ;;  %v824_v51 = vrot.slane %v3446_v11, 2  ;;  %v2987_v43 = vld [vmem:[%s3731_s3 + $0x250] sm:$0xff] }
 0x152   :  { %v594_v49 = vpack.c.b16 %v593_v44, %v593_v44  ;;  %v908_v12 = vrot.slane %v3446_v11, 3  ;;  %v992_v14 = vrot.slane %v3446_v11, 4  ;;  %v547_v15 = vadd.f32 %v3440_v27, %v539_v6  ;;  %v2995_v44 = vld [vmem:[%s3731_s3 + $0x290] sm:$0xff] }
 0x153   :  { %v658_v54 = vsel %vm592_vm15, %v657_v45, %v3444_v40  ;;  %v741_v55 = vsel %vm592_vm15, %v740_v47, %v739_v46  ;;  %v825_v59 = vsel %vm592_vm15, %v824_v51, %v823_v50  ;;  %v1076_v17 = vrot.slane %v3446_v11, 5  ;;  %v3004_v40 = vld [vmem:[%s3731_s3 + $0x2d8] sm:$0xff]  ;;  %v2978_v46 = vld [vmem:[%s3731_s3 + $0x208] sm:$0xff] }
 0x154   :  { %652 = vmatmul.bf16.vlgmr.msrb.gmra.mxu0 %v594_v49  ;;  %v659_v57 = vpack.c.b16 %v658_v54, %v658_v54  ;;  %v742_v58 = vpack.c.b16 %v741_v55, %v741_v55  ;;  %v826_v63 = vpack.c.b16 %v825_v59, %v825_v59  ;;  %v1160_v18 = vrot.slane %v3446_v11, 6  ;;  %v2986_v49 = vld [vmem:[%s3731_s3 + $0x248] sm:$0xff]  ;;  %v3016_v55 = vld [vmem:[%s3731_s3 + $0x338] sm:$0xff] }
 0x155   :  { %1301 = vmatpush.bf16.msrb.mxu0 %v2984_v38  ;;  %v909_v24 = vsel %vm592_vm15, %v908_v12, %v907_v16  ;;  %v993_v28 = vsel %vm592_vm15, %v992_v14, %v991_v20  ;;  %v551_v27 = vmax.f32 %v547_v15, 0.0  ;;  %v1077_v30 = vsel %vm592_vm15, %v1076_v17, %v1075_v25  ;;  %v3003_v38 = vld [vmem:[%s3731_s3 + $0x2d0] sm:$0xff]  ;;  %v2994_v50 = vld [vmem:[%s3731_s3 + $0x288] sm:$0xff]  ;;  %v3029_v20 = vld [vmem:[%s3731_s3 + $0x3a0] sm:$0xff] }
 0x156   :  { %717 = vmatmul.bf16.vlgmr.msrb.gmra.mxu1 %v659_v57  ;;  %800 = vmatmul.bf16.vlgmr.msrb.gmra.mxu2 %v742_v58  ;;  %v1161_v31 = vsel %vm592_vm15, %v1160_v18, %v1159_v26  ;;  %v910_v32 = vpack.c.b16 %v909_v24, %v909_v24  ;;  %v994_v34 = vpack.c.b16 %v993_v28, %v993_v28  ;;  %v3002_v51 = vld [vmem:[%s3731_s3 + $0x2c8] sm:$0xff]  ;;  %v2985_v57 = vld [vmem:[%s3731_s3 + $0x240] sm:$0xff]  ;;  %v3039_v12 = vld [vmem:[%s3731_s3 + $0x3f0] sm:$0xff] }
 0x157   :  { %884 = vmatmul.bf16.vlgmr.msrb.gmra.mxu3 %v826_v63  ;;  %1384 = vmatpush.bf16.msrb.mxu1 %v2992_v56  ;;  %v1078_v37 = vpack.c.b16 %v1077_v30, %v1077_v30  ;;  %v1162_v39 = vpack.c.b16 %v1161_v31, %v1161_v31  ;;  %v1227_v41 = vpack.c.bf16 %v551_v27, %v551_v27  ;;  %v2993_v58 = vld [vmem:[%s3731_s3 + $0x280] sm:$0xff]  ;;  %v3014_v14 = vld [vmem:[%s3731_s3 + $0x328] sm:$0xff]  ;;  %v3028_v24 = vld [vmem:[%s3731_s3 + $0x398] sm:$0xff] }
 0x158   :  { %1468 = vmatpush.bf16.msrb.mxu2 %v3000_v60  ;;  %1552 = vmatpush.bf16.msrb.mxu3 %v3008_v61  ;;  %v1226_v11 = vpack.c.bf16 %v549_v33, %v549_v33  ;;  %v3001_v61 = vld [vmem:[%s3731_s3 + $0x2c0] sm:$0xff]  ;;  %v3022_v15 = vld [vmem:[%s3731_s3 + $0x368] sm:$0xff]  ;;  %v3036_v25 = vld [vmem:[%s3731_s3 + $0x3d8] sm:$0xff] }
 0x159   :  { %1302 = vmatpush.bf16.msrb.mxu0 %v2983_v0  ;;  %v3546_v45 = vunpack.c.l.b16 %v1227_v41  ;;  %v3032_v0 = vld [vmem:[%s3731_s3 + $0x3b8] sm:$0xff]  ;;  %v3030_v16 = vld [vmem:[%s3731_s3 + $0x3a8] sm:$0xff]  ;;  %v3013_v18 = vld [vmem:[%s3731_s3 + $0x320] sm:$0xff] }
 0x15a   :  { %v3551_v47 = vunpack.c.l.b16 %v1226_v11  ;;  %v3038_v17 = vld [vmem:[%s3731_s3 + $0x3e8] sm:$0xff]  ;;  %v3011_v26 = vld [vmem:[%s3731_s3 + $0x310] sm:$0xff]  ;;  %v3017_v41 = vld [vmem:[%s3731_s3 + $0x340] sm:$0xff] }
 0x15b   :  { %1385 = vmatpush.bf16.msrb.mxu1 %v2991_v1  ;;  %v1249_v54 = vrot.slane %v3546_v45, 7  ;;  %v1416_v56 = vrot.slane %v3546_v45, 1  ;;  %v1500_v60 = vrot.slane %v3546_v45, 2  ;;  %v3019_v28 = vld [vmem:[%s3731_s3 + $0x350] sm:$0xff]  ;;  %v3010_v30 = vld [vmem:[%s3731_s3 + $0x308] sm:$0xff]  ;;  %v3025_v11 = vld [vmem:[%s3731_s3 + $0x380] sm:$0xff] }
 0x15c   :  { %1469 = vmatpush.bf16.msrb.mxu2 %v2999_v3  ;;  %1553 = vmatpush.bf16.msrb.mxu3 %v3007_v4  ;;  %v1332_v59 = vrot.slane %v3551_v47, 1  ;;  %v1415_v63 = vrot.slane %v3551_v47, 2  ;;  %v1499_v2 = vrot.slane %v3551_v47, 3  ;;  %v3015_v4 = vld [vmem:[%s3731_s3 + $0x330] sm:$0xff]  ;;  %v3018_v31 = vld [vmem:[%s3731_s3 + $0x348] sm:$0xff] }
 0x15d   :  { %1303 = vmatpush.bf16.msrb.mxu0 %v2982_v5  ;;  %v1250_v52 = vsel %vm592_vm15, %v1249_v54, %v3551_v47  ;;  %v3027_v27 = vld [vmem:[%s3731_s3 + $0x390] sm:$0xff]  ;;  %v3034_v33 = vld [vmem:[%s3731_s3 + $0x3c8] sm:$0xff] }
 0x15e   :  { %v1333_v1 = vsel %vm592_vm15, %v3546_v45, %v1332_v59  ;;  %v1417_v3 = vsel %vm592_vm15, %v1416_v56, %v1415_v63  ;;  %v1501_v5 = vsel %vm592_vm15, %v1500_v60, %v1499_v2  ;;  %v1251_v6 = vpack.c.b16 %v1250_v52, %v1250_v52 }
 0x15f   :  { %1386 = vmatpush.bf16.msrb.mxu1 %v2990_v7  ;;  %v1334_v7 = vpack.c.b16 %v1333_v1, %v1333_v1 }
 0x160   :  { %1470 = vmatpush.bf16.msrb.mxu2 %v2998_v9  ;;  %1554 = vmatpush.bf16.msrb.mxu3 %v3006_v10  ;;  %v1418_v9 = vpack.c.b16 %v1417_v3, %v1417_v3  ;;  %v3031_v10 = vld [vmem:[%s3731_s3 + $0x3b0] sm:$0xff]  ;;  %v1915_v3 = vld [vmem:[%s3735_s4 + $0x38] sm:$0xff] }
 0x161   :  { %1304 = vmatpush.bf16.msrb.mxu0 %v2981_v13  ;;  %v1502_v13 = vpack.c.b16 %v1501_v5, %v1501_v5 }
 0x163   :  { %1387 = vmatpush.bf16.msrb.mxu1 %v2989_v19  ;;  %v3021_v19 = vld [vmem:[%s3731_s3 + $0x360] sm:$0xff] }
 0x164   :  { %1471 = vmatpush.bf16.msrb.mxu2 %v2997_v22  ;;  %1555 = vmatpush.bf16.msrb.mxu3 %v3005_v23  ;;  %v3012_v22 = vld [vmem:[%s3731_s3 + $0x318] sm:$0xff] }
 0x165   :  { %968 = vmatmul.bf16.vlgmr.msra.gmra.mxu0 %v910_v32  ;;  %v3020_v23 = vld [vmem:[%s3731_s3 + $0x358] sm:$0xff]  ;;  %v3026_v32 = vld [vmem:[%s3731_s3 + $0x388] sm:$0xff] }
 0x166   :  { %1305 = vmatpush.bf16.msrb.mxu0 %v2980_v29  ;;  %1052 = vmatmul.bf16.vlgmr.msra.gmra.mxu1 %v994_v34  ;;  %v3035_v29 = vld [vmem:[%s3731_s3 + $0x3d0] sm:$0xff]  ;;  %v1584_v34 = vrot.slane %v3546_v45, 3 }
 0x167   :  { %1136 = vmatmul.bf16.vlgmr.msra.gmra.mxu2 %v1078_v37  ;;  %1220 = vmatmul.bf16.vlgmr.msra.gmra.mxu3 %v1162_v39  ;;  %v1583_v37 = vrot.slane %v3551_v47, 4  ;;  %v1752_v39 = vrot.slane %v3546_v45, 5 }
 0x168   :  { %1388 = vmatpush.bf16.msrb.mxu1 %v2988_v35  ;;  %1472 = vmatpush.bf16.msrb.mxu2 %v2996_v36  ;;  %v1668_v35 = vrot.slane %v3546_v45, 4  ;;  %v3009_v36 = vld [vmem:[%s3731_s3 + $0x300] sm:$0xff] }
 0x169   :  { %1556 = vmatpush.bf16.msrb.mxu3 %v3004_v40  ;;  %v1836_v40 = vrot.slane %v3546_v45, 6  ;;  %v1835_v45 = vrot.slane %v3551_v47, 7 }
 0x16a   :  { %1306 = vmatpush.bf16.msrb.mxu0 %v2979_v42  ;;  %v1667_v42 = vrot.slane %v3551_v47, 5 }
 0x16c   :  { %1389 = vmatpush.bf16.msrb.mxu1 %v2987_v43  ;;  %1473 = vmatpush.bf16.msrb.mxu2 %v2995_v44  ;;  %v3033_v43 = vld [vmem:[%s3731_s3 + $0x3c0] sm:$0xff]  ;;  %v1585_v44 = vsel %vm592_vm15, %v1584_v34, %v1583_v37 }
 0x16d   :  { %1557 = vmatpush.bf16.msrb.mxu3 %v3003_v38  ;;  %v1751_v38 = vrot.slane %v3551_v47, 6 }
 0x16e   :  { %1307 = vmatpush.bf16.msrb.mxu0 %v2978_v46  ;;  %v1669_v46 = vsel %vm592_vm15, %v1668_v35, %v1667_v42  ;;  %v3044_v42 = vld [vmem:[%s3733_s7] ss:$0 sm:$0xff] }
 0x170   :  { %1390 = vmatpush.bf16.msrb.mxu1 %v2986_v49  ;;  %1474 = vmatpush.bf16.msrb.mxu2 %v2994_v50  ;;  %v1753_v49 = vsel %vm592_vm15, %v1752_v39, %v1751_v38  ;;  %v1837_v50 = vsel %vm592_vm15, %v1836_v40, %v1835_v45 }
 0x171   :  { %1558 = vmatpush.bf16.msrb.mxu3 %v3002_v51  ;;  %v1586_v51 = vpack.c.b16 %v1585_v44, %v1585_v44  ;;  %v1754_v54 = vpack.c.b16 %v1753_v49, %v1753_v49  ;;  %v3045_v49 = vld [vmem:[%s3734_s8] ss:$0 sm:$0xff] }
 0x172   :  { %1308 = vmatpush.bf16.msrb.mxu0 %v2977_v53  ;;  %v1670_v53 = vpack.c.b16 %v1669_v46, %v1669_v46 }
 0x174   :  { %1391 = vmatpush.bf16.msrb.mxu1 %v2985_v57  ;;  %1475 = vmatpush.bf16.msrb.mxu2 %v2993_v58 }
 0x175   :  { %1559 = vmatpush.bf16.msrb.mxu3 %v3001_v61  ;;  %1309 = vmatmul.bf16.vlgmr.msrb.gmra.mxu0 %v1251_v6 }
 0x176   :  { %1636 = vmatpush.bf16.msra.mxu0 %v3016_v55  ;;  %v1838_v55 = vpack.c.b16 %v1837_v50, %v1837_v50 }
 0x177   :  { %1392 = vmatmul.bf16.vlgmr.msrb.gmra.mxu1 %v1334_v7  ;;  %1476 = vmatmul.bf16.vlgmr.msrb.gmra.mxu2 %v1418_v9  ;;  %v1914_v7 = vld [vmem:[%s3735_s4 + $0x30] sm:$0xff] }
 0x178   :  { %1720 = vmatpush.bf16.msra.mxu1 %v3024_v62  ;;  %1804 = vmatpush.bf16.msra.mxu2 %v3032_v0 }
 0x179   :  { %1888 = vmatpush.bf16.msra.mxu3 %v3040_v48 }
 0x17a   :  { %1637 = vmatpush.bf16.msra.mxu0 %v3015_v4  ;;  %1560 = vmatmul.bf16.vlgmr.msrb.gmra.mxu3 %v1502_v13  ;;  %v1912_v13 = vld [vmem:[%s3735_s4 + $0x20] sm:$0xff] }
 0x17c   :  { %1721 = vmatpush.bf16.msra.mxu1 %v3023_v8  ;;  %1805 = vmatpush.bf16.msra.mxu2 %v3031_v10  ;;  %v1913_v8 = vld [vmem:[%s3735_s4 + $0x28] sm:$0xff] }
 0x17d   :  { %1889 = vmatpush.bf16.msra.mxu3 %v3039_v12 }
 0x17e   :  { %1638 = vmatpush.bf16.msra.mxu0 %v3014_v14 }
 0x180   :  { %1722 = vmatpush.bf16.msra.mxu1 %v3022_v15  ;;  %1806 = vmatpush.bf16.msra.mxu2 %v3030_v16 }
 0x181   :  { %1890 = vmatpush.bf16.msra.mxu3 %v3038_v17  ;;  %v1911_v17 = vld [vmem:[%s3735_s4 + $0x18] sm:$0xff] }
 0x182   :  { %1639 = vmatpush.bf16.msra.mxu0 %v3013_v18 }
 0x184   :  { %1723 = vmatpush.bf16.msra.mxu1 %v3021_v19  ;;  %1807 = vmatpush.bf16.msra.mxu2 %v3029_v20 }
 0x185   :  { %1891 = vmatpush.bf16.msra.mxu3 %v3037_v21  ;;  %v1910_v21 = vld [vmem:[%s3735_s4 + $0x10] sm:$0xff] }
 0x186   :  { %1640 = vmatpush.bf16.msra.mxu0 %v3012_v22 }
 0x188   :  { %1724 = vmatpush.bf16.msra.mxu1 %v3020_v23  ;;  %1808 = vmatpush.bf16.msra.mxu2 %v3028_v24  ;;  %v1909_v23 = vld [vmem:[%s3735_s4 + $0x8] sm:$0xff]  ;;  %v1908_v24 = vld [vmem:[%s3735_s4] sm:$0xff] }
 0x189   :  { %1892 = vmatpush.bf16.msra.mxu3 %v3036_v25 }
 0x18a   :  { %1641 = vmatpush.bf16.msra.mxu0 %v3011_v26 }
 0x18c   :  { %1725 = vmatpush.bf16.msra.mxu1 %v3019_v28  ;;  %1809 = vmatpush.bf16.msra.mxu2 %v3027_v27 }
 0x18d   :  { %1893 = vmatpush.bf16.msra.mxu3 %v3035_v29 }
 0x18e   :  { %1642 = vmatpush.bf16.msra.mxu0 %v3010_v30 }
 0x190   :  { %1726 = vmatpush.bf16.msra.mxu1 %v3018_v31  ;;  %1810 = vmatpush.bf16.msra.mxu2 %v3026_v32 }
 0x191   :  { %1894 = vmatpush.bf16.msra.mxu3 %v3034_v33 }
 0x192   :  { %1643 = vmatpush.bf16.msra.mxu0 %v3009_v36 }
 0x194   :  { %1727 = vmatpush.bf16.msra.mxu1 %v3017_v41  ;;  %1811 = vmatpush.bf16.msra.mxu2 %v3025_v11 }
 0x195   :  { %1895 = vmatpush.bf16.msra.mxu3 %v3033_v43  ;;  %1644 = vmatmul.bf16.vlgmr.msra.gmra.mxu0 %v1586_v51 }
 0x196   :  { %1932 = vmatpush.msrb.mxu0 %v1915_v3 }
 0x197   :  { %1728 = vmatmul.bf16.vlgmr.msra.gmra.mxu1 %v1670_v53  ;;  %1812 = vmatmul.bf16.vlgmr.msra.gmra.mxu2 %v1754_v54 }
 0x198   :  { %1896 = vmatmul.bf16.vlgmr.msra.gmra.mxu3 %v1838_v55  ;;  %1933 = vmatpush.msrb.mxu0 %v1914_v7 }
 0x19a   :  { %1934 = vmatpush.msrb.mxu0 %v1913_v8 }
 0x19c   :  { %1935 = vmatpush.msrb.mxu0 %v1912_v13 }
 0x19e   :  { %1936 = vmatpush.msrb.mxu0 %v1911_v17 }
 0x1a0   :  { %1937 = vmatpush.msrb.mxu0 %v1910_v21 }
 0x1a2   :  { %1938 = vmatpush.msrb.mxu0 %v1909_v23 }
 0x1a4   :  { %1939 = vmatpush.msrb.mxu0 %v1908_v24 }
 0x1d1   :  { %v653_v56 = vpop.f32.mrf.mxu0 }
 0x1d3   :  { %v718_v47 = vpop.f32.mrf.mxu1 }
 0x1d4   :  { %v719_v5 = vadd.f32 %v718_v47, %v653_v56 }
 0x1d9   :  { %v655_v57 = vpop.f32.mrf.mxu0  ;;  %v801_v58 = vpop.f32.mrf.mxu2 }
 0x1da   :  { %v885_v59 = vpop.f32.mrf.mxu3  ;;  %v805_v12 = vadd.f32 %v801_v58, %v719_v5  ;;  %v1958_v57 = vlaneseq }
 0x1db   :  { %v720_v60 = vpop.f32.mrf.mxu1 }
 0x1dc   :  { %v889_v14 = vadd.f32 %v885_v59, %v805_v12 }
 0x1e1   :  { %v803_v61 = vpop.f32.mrf.mxu2 }
 0x1e2   :  { %v887_v62 = vpop.f32.mrf.mxu3  ;;  %v969_v63 = vpop.f32.mrf.mxu0  ;;  %v1959_v61 = vand.u32 127, %v1958_v57 }
 0x1e3   :  { %v1053_v0 = vpop.f32.mrf.mxu1  ;;  %v973_v15 = vadd.f32 %v969_v63, %v889_v14 }
 0x1e4   :  { %vm1960_vm3 = vcmp.eq.s32.totalorder %v1959_v61, 0 }
 0x1e5   :  { %v1057_v22 = vadd.f32 %v1053_v0, %v973_v15 }
 0x1ea   :  { %v971_v48 = vpop.f32.mrf.mxu0  ;;  %v1137_v52 = vpop.f32.mrf.mxu2 }
 0x1eb   :  { %v1221_v1 = vpop.f32.mrf.mxu3  ;;  %v1055_v2 = vpop.f32.mrf.mxu1  ;;  %v1141_v25 = vadd.f32 %v1137_v52, %v1057_v22 }
 0x1ed   :  { %v1225_v27 = vadd.f32 %v1221_v1, %v1141_v25 }
 0x1f2   :  { %v1139_v4 = vpop.f32.mrf.mxu2  ;;  %v1310_v9 = vpop.f32.mrf.mxu0 }
 0x1f3   :  { %v1223_v6 = vpop.f32.mrf.mxu3  ;;  %v1314_v29 = vadd.f32 %v1310_v9, %v1225_v27 }
 0x1f4   :  { %v1393_v10 = vpop.f32.mrf.mxu1 }
 0x1f5   :  { %v1397_v30 = vadd.f32 %v1393_v10, %v1314_v29 }
 0x1fa   :  { %v1477_v16 = vpop.f32.mrf.mxu2  ;;  %v1312_v18 = vpop.f32.mrf.mxu0 }
 0x1fb   :  { %v1481_v31 = vadd.f32 %v1477_v16, %v1397_v30 }
 0x1fc   :  { %v1395_v20 = vpop.f32.mrf.mxu1 }
 0x1fd   :  { %v1561_v19 = vpop.f32.mrf.mxu3 }
 0x1fe   :  { %v1565_v33 = vadd.f32 %v1561_v19, %v1481_v31 }
 0x202   :  { %v1479_v26 = vpop.f32.mrf.mxu2 }
 0x205   :  { %v1563_v28 = vpop.f32.mrf.mxu3 }
 0x212   :  { %v1645_v32 = vpop.f32.mrf.mxu0 }
 0x213   :  { %v1649_v35 = vadd.f32 %v1645_v32, %v1565_v33 }
 0x214   :  { %v1729_v34 = vpop.f32.mrf.mxu1 }
 0x215   :  { %v1733_v36 = vadd.f32 %v1729_v34, %v1649_v35 }
 0x21a   :  { %v1647_v37 = vpop.f32.mrf.mxu0  ;;  %v1813_v39 = vpop.f32.mrf.mxu2 }
 0x21b   :  { %v1817_v40 = vadd.f32 %v1813_v39, %v1733_v36  ;;  %v1897_v41 = vpop.f32.mrf.mxu3 }
 0x21c   :  { %v1731_v11 = vpop.f32.mrf.mxu1 }
 0x21d   :  { %v1901_v43 = vadd.f32 %v1897_v41, %v1817_v40 }
 0x21f   :  { %v1906_v44 = vadd.f32 %v3044_v42, %v1901_v43 }
 0x221   :  { %v1907_v38 = vmax.f32 %v1906_v44, 0.0 }
 0x222   :  { %v1815_v45 = vpop.f32.mrf.mxu2 }
 0x223   :  { %v1899_v46 = vpop.f32.mrf.mxu3  ;;  %2881 = vmatmul.msk.f32.vlgmr.msrb.gmra.mxu0 %vm1920_vm0, %v1907_v38 }
 0x2a0   :  { %v1941_v50 = vpop.f32.mrf.mxu0 }
 0x2a1   :  { %v1942_v51 = vadd.f32 %v3045_v49, %v1941_v50 }
 0x2a3   :  { %v1945_v53 = vmin.f32 %v1942_v51, 20.0  ;;  %vm1944_vm2 = vcmp.gt.f32.partialorder %v1942_v51, 20.0 }
 0x2a5   :  { %v1946_v54 = vmul.f32 1.442695, %v1945_v53 }
 0x2a7   :  { %3046 = vpow2.f32 %v1946_v54 }
 0x2ad   :  { %v3047_v55 = vpop.eup %3046 }
 0x2ae   :  { %v1948_v56 = vadd.f32 1.0, %v3047_v55  ;;  %v1951_v47 = vmul.f32 -0.5, %v3047_v55  ;;  %v1954_v59 = vand.u32 2147483647, %v3047_v55 }
 0x2b0   :  { %3048 = vlog2.f32 %v1948_v56  ;;  %v1952_v58 = vadd.f32 1.0, %v1951_v47  ;;  %vm1955_vm1 = vcmp.lt.f32.partialorder %v1954_v59, 0.0004427343 }
 0x2b2   :  { %v1953_v63 = vmul.f32 %v3047_v55, %v1952_v58 }
 0x2b6   :  { %v3049_v60 = vpop.eup %3048 }
 0x2b7   :  { %v1950_v62 = vmul.f32 0.6931472, %v3049_v60 }
 0x2b9   :  { %v1956_v0 = vsel %vm1955_vm1, %v1953_v63, %v1950_v62 }
 0x2ba   :  { %v1957_v48 = vsel %vm1944_vm2, %v1942_v51, %v1956_v0 }
 0x2bb   :  { %v1961_v52 = vadd.f32 0.001, %v1957_v48 }
 0x2bd   :  { %v1962_v1 = vsel %vm1960_vm3, %v1942_v51, %v1961_v52 }
 0x2be   :  { %1964 = vst.msk [vmem:[%s3736_s9] sm:$0x3] %vm1963_vm4, %v1962_v1 }

</bundles_post_ra>
